<compile_context>
chip_gen: v6e
topology: v6e:2x2x1
jax: 0.10.0
libtpu: 0.0.40
codegen_flags: <defaults>
</compile_context>

<pallas_src>
import functools

import jax
import jax.numpy as jnp
from jax import lax
from jax.experimental import pallas as pl
from jax.experimental.pallas import tpu as pltpu

# Finite "-inf" used to mask padded KV columns.  Finite on purpose: a fully
# padded KV tile then yields p = exp(0) garbage that is exactly wiped by the
# next valid tile's alpha = exp(-1e30 - m) = 0 instead of producing NaN.
_NEG_BIG = -1e30


def _round_up(x, m):
    return (x + m - 1) // m * m


def _clamp_vmem(estimate_bytes):
    # v7x has 64 MiB VMEM per TensorCore (vs 128 MiB on v5e/v6e): cap the
    # scoped limit at 48 MiB; keep at least 16 MiB of headroom for the runtime.
    return int(min(48 * 1024 * 1024, max(16 * 1024 * 1024, 4 * estimate_bytes)))


# -----------------------------------------------------------------------------
# Prologue kernel: project x -> q, k, v once (conv1x1+BN+ReLU stacks, folded).
# -----------------------------------------------------------------------------
def _make_proj_kernel(n_q, n_k_rest, n_v_rest, ct, n_params):
    """Param order: query layers (scale folded into last) | fused kv first
    layer | key remaining layers | value remaining layers.  Weights bf16,
    biases fp32 (each layer is relu(x @ W_eff + b_eff))."""

    def kernel(*refs):
        x_ref = refs[0]
        params = refs[1:1 + n_params]
        q_out, k_out, v_out = refs[1 + n_params:4 + n_params]

        cur = [0]

        def take():
            r = params[cur[0]]
            cur[0] += 1
            return r

        q_refs = [(take(), take()) for _ in range(n_q)]
        kv_w, kv_b = take(), take()
        k_rest = [(take(), take()) for _ in range(n_k_rest)]
        v_rest = [(take(), take()) for _ in range(n_v_rest)]

        def layer(h, w_bf16, b_f32):
            # bf16 operands, fp32 accumulation on the MXU.
            y = jnp.dot(h.astype(jnp.bfloat16), w_bf16,
                        preferred_element_type=jnp.float32)
            return jnp.maximum(y + b_f32, 0.0)

        x = x_ref[0]                                  # (TP, Cin) bf16

        # Query projection (softmax 1/sqrt(Ct) already folded into last layer).
        h = x
        for w_ref, b_ref in q_refs:
            h = layer(h, w_ref[...], b_ref[...])
        q_out[0] = h.astype(q_out.dtype)

        # Fused first key/value layer (shared input slab -> one wider matmul).
        kv = layer(x, kv_w[...], kv_b[...])           # (TP, 2*Ct) f32
        k_h = kv[:, :ct]
        v_h = kv[:, ct:]
        for w_ref, b_ref in k_rest:
            k_h = layer(k_h, w_ref[...], b_ref[...])
        for w_ref, b_ref in v_rest:
            v_h = layer(v_h, w_ref[...], b_ref[...])
        k_out[0] = k_h.astype(k_out.dtype)
        v_out[0] = v_h.astype(v_out.dtype)

    return kernel


# -----------------------------------------------------------------------------
# Main kernel: flash-style attention over a (batch, q-tile, kv-tile) grid.
# -----------------------------------------------------------------------------
def _make_attn_kernel(n_o, n_params, n_valid, n_pad, tk, use_bf16_exp):
    """Param order: out layers[:-1] | out last layer (bias as (Cout,1) column).
    Online-softmax scratch (m, l, acc) lives in VMEM; the output block is the
    same across the KV axis (resident accumulator) and written at the last
    KV step in transposed orientation -> lane-dense (Cout, TQ) store."""

    needs_mask = n_pad > n_valid

    def kernel(*refs):
        q_ref, k_ref, v_ref = refs[0], refs[1], refs[2]
        params = refs[3:3 + n_params]
        out_ref = refs[3 + n_params]
        m_scr, l_scr, acc_scr = refs[3 + n_params + 1:]

        ki = pl.program_id(2)
        n_kv = pl.num_programs(2)

        cur = [0]

        def take():
            r = params[cur[0]]
            cur[0] += 1
            return r

        o_head = [(take(), take()) for _ in range(n_o - 1)]
        ow_ref, ob_ref = take(), take()

        def layer(h, w_bf16, b_f32):
            y = jnp.dot(h.astype(jnp.bfloat16), w_bf16,
                        preferred_element_type=jnp.float32)
            return jnp.maximum(y + b_f32, 0.0)

        @pl.when(ki == 0)
        def _init():
            m_scr[...] = jnp.full(m_scr.shape, -jnp.inf, jnp.float32)
            l_scr[...] = jnp.zeros(l_scr.shape, jnp.float32)
            acc_scr[...] = jnp.zeros(acc_scr.shape, jnp.float32)

        q = q_ref[0]                                  # (TQ, Ct) bf16 (resident)
        k = k_ref[0]                                  # (TK, Ct) bf16 (streamed)
        v = v_ref[0]                                  # (TK, Ct) bf16 (streamed)

        # q @ k^T via a shared contracting dim (no explicit transpose).
        s = lax.dot_general(q, k, (((1,), (1,)), ((), ())),
                            preferred_element_type=jnp.float32)   # (TQ, TK)

        if needs_mask:
            col = ki * tk + lax.broadcasted_iota(jnp.int32, s.shape, 1)
            s = jnp.where(col < n_valid, s, _NEG_BIG)

        m_prev = m_scr[...]
        m_new = jnp.maximum(m_prev, jnp.max(s, axis=-1, keepdims=True))
        alpha = jnp.exp(m_prev - m_new)
        z = s - m_new
        if use_bf16_exp:
            # bf16 EUP (v6e/v7x only); do NOT enable on v5e.
            p = jnp.exp(z.astype(jnp.bfloat16))
            p_sum = jnp.sum(p.astype(jnp.float32), axis=-1, keepdims=True)
            p_mm = p
        else:
            p = jnp.exp(z)
            p_sum = jnp.sum(p, axis=-1, keepdims=True)
            p_mm = p.astype(jnp.bfloat16)
        l_scr[...] = alpha * l_scr[...] + p_sum
        acc_scr[...] = alpha * acc_scr[...] + jnp.dot(
            p_mm, v, preferred_element_type=jnp.float32)
        m_scr[...] = m_new

        @pl.when(ki == n_kv - 1)
        def _fin():
            inv_l = pl.reciprocal(l_scr[...], approx=True)        # EUP slot
            h = acc_scr[...] * inv_l                              # (TQ, Ct) f32
            for w_ref, b_ref in o_head:
                h = layer(h, w_ref[...], b_ref[...])
            # Last layer in transposed orientation: (Cout, TQ) = W^T @ h^T,
            # expressed as a dot_general (no transposes materialized).
            out_t = lax.dot_general(ow_ref[...], h.astype(jnp.bfloat16),
                                    (((0,), (1,)), ((), ())),
                                    preferred_element_type=jnp.float32)
            out_t = jnp.maximum(out_t + ob_ref[...], 0.0)         # (Cout, TQ)
            out_ref[0] = out_t.astype(out_ref.dtype)

    return kernel


# -----------------------------------------------------------------------------
# Parameter construction / folding.
# -----------------------------------------------------------------------------
def _fold_conv_bn(w_oi, gamma, beta, mean, var, eps=1e-5):
    """Fold 1x1 conv (out,in) weights with eval-mode BN into (in,out) W, (1,out) b."""
    inv_std = gamma / jnp.sqrt(var + eps)
    w_eff = w_oi * inv_std[:, None]            # (out, in)
    b_eff = beta - mean * inv_std              # (out,)
    return w_eff.T, b_eff[None, :]             # (in, out), (1, out)


def _init_projection(key, in_channels, out_channels, num_convs):
    """Deterministic params for a Conv1x1+BN+ReLU stack; returns folded (W,b) list."""
    layers = []
    c_in = in_channels
    for _ in range(num_convs):
        k_w, k_g, k_b, k_m, k_v, key = jax.random.split(key, 6)
        w = jax.random.normal(k_w, (out_channels, c_in), jnp.float32) * 0.2
        gamma = 1.0 + 0.1 * jax.random.normal(k_g, (out_channels,), jnp.float32)
        beta = 0.1 * jax.random.normal(k_b, (out_channels,), jnp.float32)
        mean = 0.1 * jax.random.normal(k_m, (out_channels,), jnp.float32)
        var = 1.0 + 0.1 * jax.random.uniform(k_v, (out_channels,), jnp.float32)
        layers.append(_fold_conv_bn(w, gamma, beta, mean, var))
        c_in = out_channels
    return layers


class SelfAttentionBlock3Pallas:
    def __init__(self, key_in_channels, query_in_channels, transform_channels,
                 out_channels, key_query_num_convs, value_out_num_convs,
                 feature_size, rng_key):
        k0, k1, k2, k3 = jax.random.split(rng_key, 4)
        self.transform_channels = transform_channels
        self.out_channels = out_channels
        self.query_layers = _init_projection(k0, query_in_channels,
                                             transform_channels, key_query_num_convs)
        self.key_layers = _init_projection(k1, key_in_channels,
                                           transform_channels, key_query_num_convs)
        self.value_layers = _init_projection(k2, key_in_channels,
                                             transform_channels, value_out_num_convs)
        self.out_layers = _init_projection(k3, transform_channels,
                                           out_channels, value_out_num_convs)

    # ---- parameter packing for the prologue (q/k/v projection) kernel -------
    def _proj_params(self):
        scale = float(self.transform_channels) ** (-0.5)
        flat = []
        nq = len(self.query_layers)
        # Query layers; softmax scale folded into the last layer (scale > 0, so
        # relu(s*z) == s*relu(z)).
        for i, (w, b) in enumerate(self.query_layers):
            if i == nq - 1:
                w = w * scale
                b = b * scale
            flat += [w.astype(jnp.bfloat16), b.astype(jnp.float32)]
        # Fused first key/value layer (shared input slab -> one wider matmul).
        wk0, bk0 = self.key_layers[0]
        wv0, bv0 = self.value_layers[0]
        flat += [jnp.concatenate([wk0, wv0], axis=1).astype(jnp.bfloat16),
                 jnp.concatenate([bk0, bv0], axis=1).astype(jnp.float32)]
        k_rest = self.key_layers[1:]
        v_rest = self.value_layers[1:]
        for w, b in k_rest + v_rest:
            flat += [w.astype(jnp.bfloat16), b.astype(jnp.float32)]
        return flat, (nq, len(k_rest), len(v_rest))

    # ---- parameter packing for the attention (output projection) kernel -----
    def _out_params(self):
        flat = []
        for w, b in self.out_layers[:-1]:
            flat += [w.astype(jnp.bfloat16), b.astype(jnp.float32)]
        w_ol, b_ol = self.out_layers[-1]
        # Last-layer bias stored as a (Cout, 1) column so the epilogue can
        # produce a lane-dense (Cout, TQ) tile directly.
        flat += [w_ol.astype(jnp.bfloat16), b_ol.T.astype(jnp.float32)]
        return flat, len(self.out_layers)

    @staticmethod
    def _pick_tiles(n, tq, tk):
        # Defaults target the 256-wide MXU on v6e/v7x and amortize the
        # ~0.35us/grid-step pipeline overhead.  On v5e prefer tq=256, tk=128.
        if tq is None:
            tq = min(512, _round_up(n, 128))
        tq = _round_up(max(tq, 128), 128)
        if tk is None:
            tk = 256 if tq % 256 == 0 else 128
        if tq % tk != 0:               # tk must divide tq (and hence n_pad)
            tk = 128 if tq % 128 == 0 else tq
        n_pad = _round_up(n, tq)
        return tq, tk, n_pad

    def __call__(self, x_nchw, *, tq=None, tk=None, out_dtype=jnp.bfloat16,
                 bf16_softmax_exp=False):
        B, C, H, W = x_nchw.shape
        N = H * W
        Ct = self.transform_channels
        Cout = self.out_channels
        tq, tk, n_pad = self._pick_tiles(N, tq, tk)

        # NCHW -> (B, N, C); element (b, h*W+w, c) == x[b, c, h, w] (matches the
        # PyTorch reshape(B,C,-1).permute(0,2,1)).  Cast to bf16 for the MXU,
        # pad N up to a tile multiple (padded KV columns are masked in-kernel).
        x = jnp.transpose(x_nchw, (0, 2, 3, 1)).reshape(B, N, C).astype(jnp.bfloat16)
        if n_pad != N:
            x = jnp.pad(x, ((0, 0), (0, n_pad - N), (0, 0)))

        # ------------------- prologue: project q / k / v once ----------------
        proj_params, (n_q, n_k_rest, n_v_rest) = self._proj_params()
        tile_p = tq
        proj_kernel = _make_proj_kernel(n_q, n_k_rest, n_v_rest, Ct,
                                        len(proj_params))
        proj_in_specs = [pl.BlockSpec((1, tile_p, C), lambda b, i: (b, i, 0))]
        for p in proj_params:
            proj_in_specs.append(pl.BlockSpec(
                p.shape,
                functools.partial(lambda b, i, nd: (0,) * nd, nd=p.ndim)))
        qkv_spec = pl.BlockSpec((1, tile_p, Ct), lambda b, i: (b, i, 0))

        proj_param_bytes = sum(int(p.size) * p.dtype.itemsize for p in proj_params)
        proj_flops = sum(2 * B * n_pad * w.shape[0] * w.shape[1]
                         for w, _ in (self.query_layers + self.key_layers
                                      + self.value_layers))
        proj_bytes = (B * n_pad * C * 2 + 3 * B * n_pad * Ct * 2
                      + proj_param_bytes)
        proj_vmem_est = (2 * (tile_p * C * 2 + 3 * tile_p * Ct * 2)
                         + 2 * proj_param_bytes
                         + 4 * tile_p * max(C, 2 * Ct) * 4)

        q_p, k_p, v_p = pl.pallas_call(
            proj_kernel,
            out_shape=(jax.ShapeDtypeStruct((B, n_pad, Ct), jnp.bfloat16),
                       jax.ShapeDtypeStruct((B, n_pad, Ct), jnp.bfloat16),
                       jax.ShapeDtypeStruct((B, n_pad, Ct), jnp.bfloat16)),
            grid=(B, n_pad // tile_p),
            in_specs=proj_in_specs,
            out_specs=(qkv_spec, qkv_spec, qkv_spec),
            compiler_params=pltpu.CompilerParams(
                dimension_semantics=("parallel", "parallel"),
                vmem_limit_bytes=_clamp_vmem(proj_vmem_est)),
            cost_estimate=pl.CostEstimate(
                flops=int(proj_flops), transcendentals=0,
                bytes_accessed=int(proj_bytes)),
        )(x, *proj_params)

        # ------------------- flash attention + output projection -------------
        out_params, n_o = self._out_params()
        n_q_tiles = n_pad // tq
        n_kv_tiles = n_pad // tk
        grid = (B, n_q_tiles, n_kv_tiles)

        attn_kernel = _make_attn_kernel(n_o, len(out_params), N, n_pad, tk,
                                        bf16_softmax_exp)

        in_specs = [
            # projected q tile: same block across the KV axis -> fetched once/qi
            pl.BlockSpec((1, tq, Ct), lambda b, qi, ki: (b, qi, 0)),
            # projected k / v tiles: streamed along the (arbitrary) KV axis
            pl.BlockSpec((1, tk, Ct), lambda b, qi, ki: (b, ki, 0)),
            pl.BlockSpec((1, tk, Ct), lambda b, qi, ki: (b, ki, 0)),
        ]
        for p in out_params:
            in_specs.append(pl.BlockSpec(
                p.shape,
                functools.partial(lambda b, qi, ki, nd: (0,) * nd, nd=p.ndim)))

        # Lane-dense output: (B, Cout, N_pad), tile (1, Cout, TQ); same block
        # across the KV axis -> resident accumulator, written at last KV step.
        out_specs = pl.BlockSpec((1, Cout, tq), lambda b, qi, ki: (b, 0, qi))

        out_itemsize = jnp.dtype(out_dtype).itemsize
        out_param_bytes = sum(int(p.size) * p.dtype.itemsize for p in out_params)
        attn_vmem_est = (2 * (tq * Ct * 2 + 2 * tk * Ct * 2
                              + Cout * tq * out_itemsize)       # streamed tiles (x2 buf)
                         + 2 * out_param_bytes                  # params (x2 buf)
                         + tq * Ct * 4 + 2 * tq * 4             # acc / m / l scratch
                         + 2 * tq * tk * 4)                     # live fp32 s / p

        # Updated cost estimate: no kv-recompute term.
        attn_flops = 4 * B * n_pad * n_pad * Ct                 # q@k^T and p@v
        out_flops = sum(2 * B * n_pad * w.shape[0] * w.shape[1]
                        for w, _ in self.out_layers)
        transcendentals = B * n_pad * n_pad + B * n_pad * n_kv_tiles
        bytes_accessed = (B * n_pad * Ct * 2                    # q, once per q tile
                          + B * n_q_tiles * n_pad * Ct * 2 * 2  # k, v re-streamed/q tile
                          + B * Cout * n_pad * out_itemsize
                          + out_param_bytes)

        out = pl.pallas_call(
            attn_kernel,
            out_shape=jax.ShapeDtypeStruct((B, Cout, n_pad), out_dtype),
            grid=grid,
            in_specs=in_specs,
            out_specs=out_specs,
            scratch_shapes=[
                pltpu.VMEM((tq, 1), jnp.float32),     # running max m
                pltpu.VMEM((tq, 1), jnp.float32),     # running sum l
                pltpu.VMEM((tq, Ct), jnp.float32),    # output accumulator
            ],
            compiler_params=pltpu.CompilerParams(
                dimension_semantics=("parallel", "parallel", "arbitrary"),
                vmem_limit_bytes=_clamp_vmem(attn_vmem_est)),
            cost_estimate=pl.CostEstimate(
                flops=int(attn_flops + out_flops),
                transcendentals=int(transcendentals),
                bytes_accessed=int(bytes_accessed)),
        )(q_p, k_p, v_p, *out_params)

        if n_pad != N:
            out = out[:, :, :N]
        # (B, Cout, N) -> (B, Cout, H, W) — free reshape (no transpose needed).
        return out.reshape(B, Cout, H, W)

    # Pure-JAX fp32 reference for validation (same math, no Pallas, no folding).
    def reference(self, x_nchw):
        B, C, H, W = x_nchw.shape
        x = jnp.transpose(x_nchw, (0, 2, 3, 1)).reshape(B, H * W, C)

        def proj(h, layers):
            for w, b in layers:
                h = jnp.maximum(h @ w + b, 0.0)
            return h

        q = proj(x, self.query_layers)
        k = proj(x, self.key_layers)
        v = proj(x, self.value_layers)
        sim = jnp.einsum("bnc,bmc->bnm", q, k) * (self.transform_channels ** -0.5)
        p = jax.nn.softmax(sim, axis=-1)
        ctx = jnp.einsum("bnm,bmc->bnc", p, v)
        out = proj(ctx, self.out_layers)
        return jnp.transpose(out, (0, 2, 1)).reshape(B, self.out_channels, H, W)


if __name__ == "__main__":
    key = jax.random.PRNGKey(0)
    k_x, k_p, k_x2 = jax.random.split(key, 3)

    B, C_in, H, W = 2, 4, 16, 16
    transform_channels = 32
    out_channels = 8

    block = SelfAttentionBlock3Pallas(
        key_in_channels=C_in,
        query_in_channels=C_in,
        transform_channels=transform_channels,
        out_channels=out_channels,
        key_query_num_convs=2,
        value_out_num_convs=1,
        feature_size=(H, W),
        rng_key=k_p,
    )

    # Divisible spatial size (N = 256, no padding).
    x = jax.random.normal(k_x, (B, C_in, H, W), jnp.float32)
    y = jax.block_until_ready(block(x))
    y_ref = jax.block_until_ready(block.reference(x))
    assert y.shape == (B, out_channels, H, W)
    # bf16 matmul operands / bf16 output + approx reciprocal -> few-percent tol.
    assert jnp.allclose(y.astype(jnp.float32), y_ref, atol=5e-2, rtol=5e-2), \
        "mismatch vs reference"

    # Non-divisible spatial size exercises the pad + KV-mask path (N=144 -> 256).
    H2 = W2 = 12
    x2 = jax.random.normal(k_x2, (B, C_in, H2, W2), jnp.float32)
    y2 = jax.block_until_ready(block(x2))
    y2_ref = jax.block_until_ready(block.reference(x2))
    assert y2.shape == (B, out_channels, H2, W2)
    assert jnp.allclose(y2.astype(jnp.float32), y2_ref, atol=5e-2, rtol=5e-2), \
        "mismatch vs reference (padded path)"

    print("KERNEL_OK")
</pallas_src>

<mosaic_0001>
module attributes {stable_mosaic.version = 11 : i64} {
  func.func @kernel(%arg0: i32, %arg1: i32, %arg2: memref<1x256x4xbf16, #tpu.memory_space<vmem>>, %arg3: memref<4x32xbf16, #tpu.memory_space<vmem>>, %arg4: memref<1x32xf32, #tpu.memory_space<vmem>>, %arg5: memref<32x32xbf16, #tpu.memory_space<vmem>>, %arg6: memref<1x32xf32, #tpu.memory_space<vmem>>, %arg7: memref<4x64xbf16, #tpu.memory_space<vmem>>, %arg8: memref<1x64xf32, #tpu.memory_space<vmem>>, %arg9: memref<32x32xbf16, #tpu.memory_space<vmem>>, %arg10: memref<1x32xf32, #tpu.memory_space<vmem>>, %arg11: memref<1x256x32xbf16, #tpu.memory_space<vmem>>, %arg12: memref<1x256x32xbf16, #tpu.memory_space<vmem>>, %arg13: memref<1x256x32xbf16, #tpu.memory_space<vmem>>) attributes {dimension_semantics = [#tpu.dimension_semantics<parallel>, #tpu.dimension_semantics<parallel>], iteration_bounds = array<i64: 2, 1>, scalar_prefetch = 0 : i64, scratch_operands = 0 : i64, tpu.core_type = #tpu.core_type<tc>, window_params = [{transform_indices = @transform_0, window_bounds = array<i64: 1, 256, 4>}, {pipeline_mode = #tpu.pipeline_mode<synchronous>, transform_indices = @transform_1, window_bounds = array<i64: 4, 32>}, {pipeline_mode = #tpu.pipeline_mode<synchronous>, transform_indices = @transform_2, window_bounds = array<i64: 1, 32>}, {pipeline_mode = #tpu.pipeline_mode<synchronous>, transform_indices = @transform_3, window_bounds = array<i64: 32, 32>}, {pipeline_mode = #tpu.pipeline_mode<synchronous>, transform_indices = @transform_4, window_bounds = array<i64: 1, 32>}, {pipeline_mode = #tpu.pipeline_mode<synchronous>, transform_indices = @transform_5, window_bounds = array<i64: 4, 64>}, {pipeline_mode = #tpu.pipeline_mode<synchronous>, transform_indices = @transform_6, window_bounds = array<i64: 1, 64>}, {pipeline_mode = #tpu.pipeline_mode<synchronous>, transform_indices = @transform_7, window_bounds = array<i64: 32, 32>}, {pipeline_mode = #tpu.pipeline_mode<synchronous>, transform_indices = @transform_8, window_bounds = array<i64: 1, 32>}, {transform_indices = @transform_9, window_bounds = array<i64: 1, 256, 32>}, {transform_indices = @transform_10, window_bounds = array<i64: 1, 256, 32>}, {transform_indices = @transform_11, window_bounds = array<i64: 1, 256, 32>}]} {
    %c0 = arith.constant 0 : index
    %c0_0 = arith.constant 0 : index
    %c0_1 = arith.constant 0 : index
    %0 = vector.load %arg2[%c0, %c0_0, %c0_1] : memref<1x256x4xbf16, #tpu.memory_space<vmem>>, vector<1x256x4xbf16>
    %1 = vector.shape_cast %0 : vector<1x256x4xbf16> to vector<256x4xbf16>
    %c0_2 = arith.constant 0 : index
    %c0_3 = arith.constant 0 : index
    %2 = vector.load %arg3[%c0_2, %c0_3] : memref<4x32xbf16, #tpu.memory_space<vmem>>, vector<4x32xbf16>
    %c0_4 = arith.constant 0 : index
    %c0_5 = arith.constant 0 : index
    %3 = vector.load %arg4[%c0_4, %c0_5] : memref<1x32xf32, #tpu.memory_space<vmem>>, vector<1x32xf32>
    %cst = arith.constant dense<0.000000e+00> : vector<256x32xf32>
    %4 = tpu.matmul %1, %2, %cst {dimension_numbers = #tpu.dot_dimension_numbers<[1], [0], [0], [1], [0, 0, 1, 1], [], []>} : vector<256x4xbf16>, vector<4x32xbf16>, vector<256x32xf32> -> vector<256x32xf32>
    %5 = vector.broadcast %3 : vector<1x32xf32> to vector<256x32xf32>
    %6 = arith.addf %4, %5 : vector<256x32xf32>
    %cst_6 = arith.constant 0.000000e+00 : f32
    %7 = vector.broadcast %cst_6 : f32 to vector<256x32xf32>
    %8 = arith.maximumf %6, %7 : vector<256x32xf32>
    %c0_7 = arith.constant 0 : index
    %c0_8 = arith.constant 0 : index
    %9 = vector.load %arg5[%c0_7, %c0_8] : memref<32x32xbf16, #tpu.memory_space<vmem>>, vector<32x32xbf16>
    %c0_9 = arith.constant 0 : index
    %c0_10 = arith.constant 0 : index
    %10 = vector.load %arg6[%c0_9, %c0_10] : memref<1x32xf32, #tpu.memory_space<vmem>>, vector<1x32xf32>
    %11 = arith.truncf %8 : vector<256x32xf32> to vector<256x32xbf16>
    %cst_11 = arith.constant dense<0.000000e+00> : vector<256x32xf32>
    %12 = tpu.matmul %11, %9, %cst_11 {dimension_numbers = #tpu.dot_dimension_numbers<[1], [0], [0], [1], [0, 0, 1, 1], [], []>} : vector<256x32xbf16>, vector<32x32xbf16>, vector<256x32xf32> -> vector<256x32xf32>
    %13 = vector.broadcast %10 : vector<1x32xf32> to vector<256x32xf32>
    %14 = arith.addf %12, %13 : vector<256x32xf32>
    %cst_12 = arith.constant 0.000000e+00 : f32
    %15 = vector.broadcast %cst_12 : f32 to vector<256x32xf32>
    %16 = arith.maximumf %14, %15 : vector<256x32xf32>
    %17 = arith.truncf %16 : vector<256x32xf32> to vector<256x32xbf16>
    %c0_13 = arith.constant 0 : index
    %c0_14 = arith.constant 0 : index
    %c0_15 = arith.constant 0 : index
    %18 = vector.load %arg11[%c0_13, %c0_14, %c0_15] : memref<1x256x32xbf16, #tpu.memory_space<vmem>>, vector<1x256x32xbf16>
    %19 = vector.shape_cast %18 : vector<1x256x32xbf16> to vector<256x32xbf16>
    %20 = vector.shape_cast %17 : vector<256x32xbf16> to vector<1x256x32xbf16>
    tpu.vector_store %arg11[%c0_13, %c0_14, %c0_15], %20 {strides = array<i32>} : memref<1x256x32xbf16, #tpu.memory_space<vmem>>, vector<1x256x32xbf16>,
    %c0_16 = arith.constant 0 : index
    %c0_17 = arith.constant 0 : index
    %21 = vector.load %arg7[%c0_16, %c0_17] : memref<4x64xbf16, #tpu.memory_space<vmem>>, vector<4x64xbf16>
    %c0_18 = arith.constant 0 : index
    %c0_19 = arith.constant 0 : index
    %22 = vector.load %arg8[%c0_18, %c0_19] : memref<1x64xf32, #tpu.memory_space<vmem>>, vector<1x64xf32>
    %cst_20 = arith.constant dense<0.000000e+00> : vector<256x64xf32>
    %23 = tpu.matmul %1, %21, %cst_20 {dimension_numbers = #tpu.dot_dimension_numbers<[1], [0], [0], [1], [0, 0, 1, 1], [], []>} : vector<256x4xbf16>, vector<4x64xbf16>, vector<256x64xf32> -> vector<256x64xf32>
    %24 = vector.broadcast %22 : vector<1x64xf32> to vector<256x64xf32>
    %25 = arith.addf %23, %24 : vector<256x64xf32>
    %cst_21 = arith.constant 0.000000e+00 : f32
    %26 = vector.broadcast %cst_21 : f32 to vector<256x64xf32>
    %27 = arith.maximumf %25, %26 : vector<256x64xf32>
    %28 = vector.extract_strided_slice %27 {offsets = [0, 0], sizes = [256, 32], strides = [1, 1]} : vector<256x64xf32> to vector<256x32xf32>
    %29 = vector.extract_strided_slice %27 {offsets = [0, 32], sizes = [256, 32], strides = [1, 1]} : vector<256x64xf32> to vector<256x32xf32>
    %c0_22 = arith.constant 0 : index
    %c0_23 = arith.constant 0 : index
    %30 = vector.load %arg9[%c0_22, %c0_23] : memref<32x32xbf16, #tpu.memory_space<vmem>>, vector<32x32xbf16>
    %c0_24 = arith.constant 0 : index
    %c0_25 = arith.constant 0 : index
    %31 = vector.load %arg10[%c0_24, %c0_25] : memref<1x32xf32, #tpu.memory_space<vmem>>, vector<1x32xf32>
    %32 = arith.truncf %28 : vector<256x32xf32> to vector<256x32xbf16>
    %cst_26 = arith.constant dense<0.000000e+00> : vector<256x32xf32>
    %33 = tpu.matmul %32, %30, %cst_26 {dimension_numbers = #tpu.dot_dimension_numbers<[1], [0], [0], [1], [0, 0, 1, 1], [], []>} : vector<256x32xbf16>, vector<32x32xbf16>, vector<256x32xf32> -> vector<256x32xf32>
    %34 = vector.broadcast %31 : vector<1x32xf32> to vector<256x32xf32>
    %35 = arith.addf %33, %34 : vector<256x32xf32>
    %cst_27 = arith.constant 0.000000e+00 : f32
    %36 = vector.broadcast %cst_27 : f32 to vector<256x32xf32>
    %37 = arith.maximumf %35, %36 : vector<256x32xf32>
    %38 = arith.truncf %37 : vector<256x32xf32> to vector<256x32xbf16>
    %c0_28 = arith.constant 0 : index
    %c0_29 = arith.constant 0 : index
    %c0_30 = arith.constant 0 : index
    %39 = vector.load %arg12[%c0_28, %c0_29, %c0_30] : memref<1x256x32xbf16, #tpu.memory_space<vmem>>, vector<1x256x32xbf16>
    %40 = vector.shape_cast %39 : vector<1x256x32xbf16> to vector<256x32xbf16>
    %41 = vector.shape_cast %38 : vector<256x32xbf16> to vector<1x256x32xbf16>
    tpu.vector_store %arg12[%c0_28, %c0_29, %c0_30], %41 {strides = array<i32>} : memref<1x256x32xbf16, #tpu.memory_space<vmem>>, vector<1x256x32xbf16>,
    %42 = arith.truncf %29 : vector<256x32xf32> to vector<256x32xbf16>
    %c0_31 = arith.constant 0 : index
    %c0_32 = arith.constant 0 : index
    %c0_33 = arith.constant 0 : index
    %43 = vector.load %arg13[%c0_31, %c0_32, %c0_33] : memref<1x256x32xbf16, #tpu.memory_space<vmem>>, vector<1x256x32xbf16>
    %44 = vector.shape_cast %43 : vector<1x256x32xbf16> to vector<256x32xbf16>
    %45 = vector.shape_cast %42 : vector<256x32xbf16> to vector<1x256x32xbf16>
    tpu.vector_store %arg13[%c0_31, %c0_32, %c0_33], %45 {strides = array<i32>} : memref<1x256x32xbf16, #tpu.memory_space<vmem>>, vector<1x256x32xbf16>,
    return
  }
  func.func @transform_0(%arg0: i32, %arg1: i32) -> (i32, i32, i32) {
    %c0_i32 = arith.constant 0 : i32
    %c0_i32_0 = arith.constant 0 : i32
    return %arg0, %arg1, %c0_i32 : i32, i32, i32
  }
  func.func @transform_1(%arg0: i32, %arg1: i32) -> (i32, i32) {
    %c0_i32 = arith.constant 0 : i32
    %c0_i32_0 = arith.constant 0 : i32
    %c0_i32_1 = arith.constant 0 : i32
    return %c0_i32, %c0_i32_0 : i32, i32
  }
  func.func @transform_2(%arg0: i32, %arg1: i32) -> (i32, i32) {
    %c0_i32 = arith.constant 0 : i32
    %c0_i32_0 = arith.constant 0 : i32
    %c0_i32_1 = arith.constant 0 : i32
    return %c0_i32, %c0_i32_0 : i32, i32
  }
  func.func @transform_3(%arg0: i32, %arg1: i32) -> (i32, i32) {
    %c0_i32 = arith.constant 0 : i32
    %c0_i32_0 = arith.constant 0 : i32
    %c0_i32_1 = arith.constant 0 : i32
    return %c0_i32, %c0_i32_0 : i32, i32
  }
  func.func @transform_4(%arg0: i32, %arg1: i32) -> (i32, i32) {
    %c0_i32 = arith.constant 0 : i32
    %c0_i32_0 = arith.constant 0 : i32
    %c0_i32_1 = arith.constant 0 : i32
    return %c0_i32, %c0_i32_0 : i32, i32
  }
  func.func @transform_5(%arg0: i32, %arg1: i32) -> (i32, i32) {
    %c0_i32 = arith.constant 0 : i32
    %c0_i32_0 = arith.constant 0 : i32
    %c0_i32_1 = arith.constant 0 : i32
    return %c0_i32, %c0_i32_0 : i32, i32
  }
  func.func @transform_6(%arg0: i32, %arg1: i32) -> (i32, i32) {
    %c0_i32 = arith.constant 0 : i32
    %c0_i32_0 = arith.constant 0 : i32
    %c0_i32_1 = arith.constant 0 : i32
    return %c0_i32, %c0_i32_0 : i32, i32
  }
  func.func @transform_7(%arg0: i32, %arg1: i32) -> (i32, i32) {
    %c0_i32 = arith.constant 0 : i32
    %c0_i32_0 = arith.constant 0 : i32
    %c0_i32_1 = arith.constant 0 : i32
    return %c0_i32, %c0_i32_0 : i32, i32
  }
  func.func @transform_8(%arg0: i32, %arg1: i32) -> (i32, i32) {
    %c0_i32 = arith.constant 0 : i32
    %c0_i32_0 = arith.constant 0 : i32
    %c0_i32_1 = arith.constant 0 : i32
    return %c0_i32, %c0_i32_0 : i32, i32
  }
  func.func @transform_9(%arg0: i32, %arg1: i32) -> (i32, i32, i32) {
    %c0_i32 = arith.constant 0 : i32
    %c0_i32_0 = arith.constant 0 : i32
    return %arg0, %arg1, %c0_i32 : i32, i32, i32
  }
  func.func @transform_10(%arg0: i32, %arg1: i32) -> (i32, i32, i32) {
    %c0_i32 = arith.constant 0 : i32
    %c0_i32_0 = arith.constant 0 : i32
    return %arg0, %arg1, %c0_i32 : i32, i32, i32
  }
  func.func @transform_11(%arg0: i32, %arg1: i32) -> (i32, i32, i32) {
    %c0_i32 = arith.constant 0 : i32
    %c0_i32_0 = arith.constant 0 : i32
    return %arg0, %arg1, %c0_i32 : i32, i32, i32
  }
}

</mosaic_0001>

<bundles_post_ra>
// kernel: tpu_custom_call.1
= control target key start
LH: loop header
LB: loop body
LE: loop exit
PB: predicated region body
PF: predicated region fallthrough
CT: control target
= control target key end

     0   :  { %s2962_s17 = smov 0   ;;  %s2964_s18 = smov 0   ;;  %s3485_s0 = inlined_call_operand.vmem [shape: bf16[2,256,4], index: 0, kind: input, shape index: {}]   ;;  %s3486_s1 = inlined_call_operand.vmem [shape: bf16[4,32], index: 1, kind: input, shape index: {}]   ;;  %s3487_s2 = inlined_call_operand.vmem [shape: f32[1,32], index: 2, kind: input, shape index: {}]   ;;  %s3488_s3 = inlined_call_operand.vmem [shape: bf16[32,32], index: 3, kind: input, shape index: {}]   ;;  %s3489_s4 = inlined_call_operand.vmem [shape: f32[1,32], index: 4, kind: input, shape index: {}]   ;;  %s3490_s5 = inlined_call_operand.vmem [shape: bf16[4,64], index: 5, kind: input, shape index: {}]   ;;  %s3491_s6 = inlined_call_operand.vmem [shape: f32[1,64], index: 6, kind: input, shape index: {}]   ;;  %s3492_s7 = inlined_call_operand.vmem [shape: bf16[32,32], index: 7, kind: input, shape index: {}]   ;;  %s3493_s8 = inlined_call_operand.vmem [shape: f32[1,32], index: 8, kind: input, shape index: {}]   ;;  %s3494_s9 = inlined_call_operand.vmem [shape: bf16[2,256,32], index: 9, kind: output, shape index: {0}]   ;;  %s3495_s10 = inlined_call_operand.vmem [shape: bf16[2,256,32], index: 10, kind: output, shape index: {1}]   ;;  %s3496_s11 = inlined_call_operand.vmem [shape: bf16[2,256,32], index: 11, kind: output, shape index: {2}]  }
   0x1   :  { %s2966_s19 = smov 0  }
   0x2 LB: > { %s34_s20 = sadd.s32 1, %s2895_s18  ;;  %p2325_p0 = scmp.ge.s32.totalorder %s2899_s19, 1  ;;  %s2899_s19 = sphi %s2966_s19, %s22_s19   ;;  %s2895_s18 = sphi %s2964_s18, %s3498_s18   ;;  %s2891_s17 = sphi %s2962_s17, %s3497_s17  }
   0x3   : > { %p36_p1 = scmp.ge.s32.totalorder %s34_s20, 2  ;;  %p367_p2 = scmp.lt.s32.totalorder %s2899_s19, 3 }
   0x5   : > { %s3500_s20 = smov (%p36_p1, %s34_s20), 0  ;;  %p368_p3 = pnand %p2325_p0, %p367_p2 }
   0x6   : > { %p434_p4 = scmp.lt.s32.totalorder (!%p368_p3), %s2891_s17, 1  ;;  %s2901_s26 = smov (!%p368_p3), 96  }
   0x7   : > { %371 = sbr.rel (%p368_p3) target bundleno = 550 (0x226), region = 56 }
   0xc   : > { %v506_v0 = vld [vmem:[%s3486_s1] sm:$0x3]  ;;  %vm643_vm0 = vcmask 1041408   ;;  %s3502_s17 = smov (!%p434_p4, %s2891_s17), 1  ;;  %vm594_vm1 = vcmask 31744   ;;  %v2873_v20 = vld [vmem:[%s3488_s3 + $0x8] sm:$0xff]  }
   0xd   : > { %2830 = vmatprep.subr.msk.bf16.mxu0 %vm643_vm0, %v506_v0  ;;  %v645_v1 = vsel %vm643_vm0, %v506_v0, 0  ;;  %v1282_v2 = vld [vmem:[%s3490_s5] sm:$0x3]  ;;  %s2986_s25 = sshll.u32 %s3502_s17, 7  ;;  %2724 = vmatprep.subr.bf16.mxu1 %v2873_v20  ;;  %v2875_v22 = vld [vmem:[%s3492_s7 + $0x8] sm:$0xff]   ;;  %vm879_vm2 = vcmask 261120  }
   0xe   : > { %2691 = vmatpush3.bf16.msra.mxu0 %v645_v1  ;;  %s2992_s28 = scalar_lea.vmem %s3485_s0, %s2986_s25  ;;  %v1291_v5 = vsel %vm643_vm0, %v1282_v2, 0  ;;  %2725 = vmatpush3.bf16.msra.mxu1 %v2873_v20  ;;  %v2874_v21 = vld [vmem:[%s3488_s3] sm:$0xff]   ;;  %s3196_s29 = scalar_lea.vmem %s3496_s11, %s2986_s25  ;;  %vm1249_vm3 = vcmask 257024  }
   0xf   : > { %2831 = vmatprep.subr.msk.bf16.mxu0 %vm643_vm0, %v1282_v2  ;;  %v2857_v3 = vld [vmem:[%s2992_s28] sm:$0xff]   ;;  %v2858_v4 = vld [vmem:[%s2992_s28 + $0x8] sm:$0xff]   ;;  %v2859_v6 = vld [vmem:[%s2992_s28 + $0x10] sm:$0xff]   ;;  %2726 = vmatprep.subr.bf16.mxu1 %v2874_v21  ;;  %s3231_s15 = scalar_lea.vmem %s3494_s9, %s2986_s25  ;;  %s3378_s23 = scalar_lea.vmem %s3495_s10, %s2986_s25 }
  0x10   : > { %2692 = vmatprep.mubr.msk.bf16.mxu0 %vm594_vm1, %v2857_v3  ;;  %v2860_v7 = vld [vmem:[%s2992_s28 + $0x18] sm:$0xff]   ;;  %v2861_v8 = vld [vmem:[%s2992_s28 + $0x20] sm:$0xff]   ;;  %v2862_v9 = vld [vmem:[%s2992_s28 + $0x28] sm:$0xff]  }
  0x11   : > { %2693 = vmatmul.mubr.msk.bf16.vlgmr.msra.gmra.mxu0 %vm594_vm1, %v2858_v4  ;;  %v2863_v10 = vld [vmem:[%s2992_s28 + $0x30] sm:$0xff]   ;;  %v2864_v11 = vld [vmem:[%s2992_s28 + $0x38] sm:$0xff]   ;;  %v2865_v12 = vld [vmem:[%s2992_s28 + $0x40] sm:$0xff]  }
  0x12   : > { %2761 = vmatpush3.bf16.msra.mxu0 %v1291_v5  ;;  %2696 = vmatprep.mubr.msk.bf16.mxu0 %vm594_vm1, %v2859_v6  ;;  %v2866_v13 = vld [vmem:[%s2992_s28 + $0x48] sm:$0xff]   ;;  %v2867_v14 = vld [vmem:[%s2992_s28 + $0x50] sm:$0xff]   ;;  %v2868_v15 = vld [vmem:[%s2992_s28 + $0x58] sm:$0xff]  }
  0x13   : > { %v2869_v16 = vld [vmem:[%s2992_s28 + $0x60] sm:$0xff]   ;;  %v2870_v17 = vld [vmem:[%s2992_s28 + $0x68] sm:$0xff]   ;;  %v2871_v18 = vld [vmem:[%s2992_s28 + $0x70] sm:$0xff]   ;;  %2727 = vmatpush3.bf16.msra.mxu1 %v2874_v21 }
  0x14   : > { %v2872_v19 = vld [vmem:[%s2992_s28 + $0x78] sm:$0xff]   ;;  %2794 = vmatprep.subr.bf16.mxu1 %v2875_v22  ;;  %v3054_v25 = vld [vmem:[%s3487_s2] ss:$0 sm:$0xff] }
  0x15   : > { %v2876_v41 = vld [vmem:[%s3492_s7] sm:$0xff]  }
  0x19   : > { %2697 = vmatmul.mubr.msk.bf16.gmra.mxu0 %vm594_vm1, %v2860_v7 }
  0x1a   : > { %2700 = vmatprep.mubr.msk.bf16.mxu0 %vm594_vm1, %v2861_v8 }
  0x21   : > { %2701 = vmatmul.mubr.msk.bf16.gmra.mxu0 %vm594_vm1, %v2862_v9 }
  0x22   : > { %2704 = vmatprep.mubr.msk.bf16.mxu0 %vm594_vm1, %v2863_v10 }
  0x29   : > { %2705 = vmatmul.mubr.msk.bf16.gmra.mxu0 %vm594_vm1, %v2864_v11 }
  0x2a   : > { %2708 = vmatprep.mubr.msk.bf16.mxu0 %vm594_vm1, %v2865_v12 }
  0x31   : > { %2709 = vmatmul.mubr.msk.bf16.gmra.mxu0 %vm594_vm1, %v2866_v13 }
  0x32   : > { %2712 = vmatprep.mubr.msk.bf16.mxu0 %vm594_vm1, %v2867_v14 }
  0x39   : > { %2713 = vmatmul.mubr.msk.bf16.gmra.mxu0 %vm594_vm1, %v2868_v15 }
  0x3a   : > { %2716 = vmatprep.mubr.msk.bf16.mxu0 %vm594_vm1, %v2869_v16 }
  0x41   : > { %2717 = vmatmul.mubr.msk.bf16.gmra.mxu0 %vm594_vm1, %v2870_v17 }
  0x42   : > { %2720 = vmatprep.mubr.msk.bf16.mxu0 %vm594_vm1, %v2871_v18 }
  0x49   : > { %2721 = vmatmul.mubr.msk.bf16.gmra.mxu0 %vm594_vm1, %v2872_v19 }
  0x4a   : > { %2762 = vmatprep.mubr.msk.bf16.mxu0 %vm594_vm1, %v2857_v3 }
  0x51   : > { %2763 = vmatmul.mubr.msk.bf16.vlgmr.msra.gmra.mxu0 %vm594_vm1, %v2858_v4 }
  0x52   : > { %2766 = vmatprep.mubr.msk.bf16.mxu0 %vm594_vm1, %v2859_v6 }
  0x59   : > { %2767 = vmatmul.mubr.msk.bf16.gmra.mxu0 %vm594_vm1, %v2860_v7 }
  0x5a   : > { %2770 = vmatprep.mubr.msk.bf16.mxu0 %vm594_vm1, %v2861_v8 }
  0x61   : > { %2771 = vmatmul.mubr.msk.bf16.gmra.mxu0 %vm594_vm1, %v2862_v9 }
  0x62   : > { %2774 = vmatprep.mubr.msk.bf16.mxu0 %vm594_vm1, %v2863_v10 }
  0x69   : > { %2775 = vmatmul.mubr.msk.bf16.gmra.mxu0 %vm594_vm1, %v2864_v11 }
  0x6a   : > { %2778 = vmatprep.mubr.msk.bf16.mxu0 %vm594_vm1, %v2865_v12 }
  0x71   : > { %2779 = vmatmul.mubr.msk.bf16.gmra.mxu0 %vm594_vm1, %v2866_v13 }
  0x72   : > { %2782 = vmatprep.mubr.msk.bf16.mxu0 %vm594_vm1, %v2867_v14 }
  0x79   : > { %2783 = vmatmul.mubr.msk.bf16.gmra.mxu0 %vm594_vm1, %v2868_v15 }
  0x7a   : > { %2786 = vmatprep.mubr.msk.bf16.mxu0 %vm594_vm1, %v2869_v16 }
  0x81   : > { %2787 = vmatmul.mubr.msk.bf16.gmra.mxu0 %vm594_vm1, %v2870_v17 }
  0x82   : > { %2790 = vmatprep.mubr.msk.bf16.mxu0 %vm594_vm1, %v2871_v18 }
  0x89   : > { %2791 = vmatmul.mubr.msk.bf16.gmra.mxu0 %vm594_vm1, %v2872_v19 }
  0xd1   : > { %v2694_v23 = vpop.f32.mrf.mxu0 }
  0xd2   : > { %v690_v29 = vadd.f32 %v2694_v23, %v3054_v25 }
  0xd3   : > { %v681_v24 = vpop.f32.mrf.mxu0 }
  0xd4   : > { %v682_v27 = vadd.f32 %v3054_v25, %v681_v24  ;;  %v810_v36 = vmax.f32 %v690_v29, 0.0 }
  0xd5   : > { %v2695_v26 = vpop.f32.mrf.mxu0 }
  0xd6   : > { %v693_v28 = vadd.f32 %v2695_v26, %v3054_v25  ;;  %v808_v34 = vmax.f32 %v682_v27, 0.0 }
  0xd7   : > { %v684_v30 = vpop.f32.mrf.mxu0 }
  0xd8   : > { %v685_v31 = vadd.f32 %v3054_v25, %v684_v30  ;;  %v811_v32 = vmax.f32 %v693_v28, 0.0 }
  0xd9   : > { %v2698_v33 = vpop.f32.mrf.mxu0 }
  0xda   : > { %v809_v35 = vmax.f32 %v685_v31, 0.0  ;;  %v846_v39 = vpack.c.bf16 %v811_v32, %v810_v36  ;;  %v706_v44 = vadd.f32 %v2698_v33, %v3054_v25 }
  0xdb   : > { %v697_v37 = vpop.f32.mrf.mxu0 }
  0xdc   : > { %v845_v38 = vpack.c.bf16 %v809_v35, %v808_v34  ;;  %v698_v42 = vadd.f32 %v3054_v25, %v697_v37  ;;  %v814_v51 = vmax.f32 %v706_v44, 0.0 }
  0xdd   : > { %v2699_v40 = vpop.f32.mrf.mxu0 }
  0xde   : > { %v709_v43 = vadd.f32 %v2699_v40, %v3054_v25  ;;  %2728 = vmatprep.mubr.msk.bf16.mxu1 %vm879_vm2, %v845_v38  ;;  %v812_v49 = vmax.f32 %v698_v42, 0.0 }
  0xdf   : > { %v700_v45 = vpop.f32.mrf.mxu0  ;;  %2729 = vmatmul.mubr.msk.bf16.vlgmr.msra.gmra.mxu1 %vm879_vm2, %v846_v39 }
  0xe0   : > { %v701_v46 = vadd.f32 %v3054_v25, %v700_v45  ;;  %2795 = vmatpush3.bf16.msra.mxu1 %v2875_v22  ;;  %v815_v47 = vmax.f32 %v709_v43, 0.0 }
  0xe1   : > { %v2702_v48 = vpop.f32.mrf.mxu0  ;;  %2796 = vmatprep.subr.bf16.mxu1 %v2876_v41 }
  0xe2   : > { %v813_v50 = vmax.f32 %v701_v46, 0.0  ;;  %v848_v54 = vpack.c.bf16 %v815_v47, %v814_v51  ;;  %v722_v58 = vadd.f32 %v2702_v48, %v3054_v25 }
  0xe3   : > { %v713_v52 = vpop.f32.mrf.mxu0 }
  0xe4   : > { %v847_v53 = vpack.c.bf16 %v813_v50, %v812_v49  ;;  %2797 = vmatpush3.bf16.msra.mxu1 %v2876_v41  ;;  %v714_v56 = vadd.f32 %v3054_v25, %v713_v52  ;;  %v818_v1 = vmax.f32 %v722_v58, 0.0 }
  0xe5   : > { %v2703_v55 = vpop.f32.mrf.mxu0 }
  0xe6   : > { %v725_v57 = vadd.f32 %v2703_v55, %v3054_v25  ;;  %2732 = vmatprep.mubr.msk.bf16.mxu1 %vm879_vm2, %v847_v53  ;;  %v816_v63 = vmax.f32 %v714_v56, 0.0 }
  0xe7   : > { %v716_v59 = vpop.f32.mrf.mxu0  ;;  %2733 = vmatmul.mubr.msk.bf16.gmra.mxu1 %vm879_vm2, %v848_v54 }
  0xe8   : > { %v717_v60 = vadd.f32 %v3054_v25, %v716_v59  ;;  %v819_v61 = vmax.f32 %v725_v57, 0.0 }
  0xe9   : > { %v2706_v62 = vpop.f32.mrf.mxu0 }
  0xea   : > { %v817_v0 = vmax.f32 %v717_v60, 0.0  ;;  %v850_v4 = vpack.c.bf16 %v819_v61, %v818_v1  ;;  %v738_v8 = vadd.f32 %v2706_v62, %v3054_v25 }
  0xeb   : > { %v729_v2 = vpop.f32.mrf.mxu0 }
  0xec   : > { %v849_v3 = vpack.c.bf16 %v817_v0, %v816_v63  ;;  %v730_v6 = vadd.f32 %v3054_v25, %v729_v2  ;;  %v822_v15 = vmax.f32 %v738_v8, 0.0 }
  0xed   : > { %v2707_v5 = vpop.f32.mrf.mxu0 }
  0xee   : > { %v741_v7 = vadd.f32 %v2707_v5, %v3054_v25  ;;  %2736 = vmatprep.mubr.msk.bf16.mxu1 %vm879_vm2, %v849_v3  ;;  %v820_v13 = vmax.f32 %v730_v6, 0.0  ;;  %v3107_v3 = vld [vmem:[%s3491_s6] ss:$0 sm:$0xff] }
  0xef   : > { %v732_v9 = vpop.f32.mrf.mxu0  ;;  %2737 = vmatmul.mubr.msk.bf16.gmra.mxu1 %vm879_vm2, %v850_v4 }
  0xf0   : > { %v733_v10 = vadd.f32 %v3054_v25, %v732_v9  ;;  %v823_v11 = vmax.f32 %v741_v7, 0.0 }
  0xf1   : > { %v2710_v12 = vpop.f32.mrf.mxu0 }
  0xf2   : > { %v821_v14 = vmax.f32 %v733_v10, 0.0  ;;  %v852_v18 = vpack.c.bf16 %v823_v11, %v822_v15  ;;  %v754_v22 = vadd.f32 %v2710_v12, %v3054_v25 }
  0xf3   : > { %v745_v16 = vpop.f32.mrf.mxu0 }
  0xf4   : > { %v851_v17 = vpack.c.bf16 %v821_v14, %v820_v13  ;;  %v746_v20 = vadd.f32 %v3054_v25, %v745_v16  ;;  %v826_v30 = vmax.f32 %v754_v22, 0.0 }
  0xf5   : > { %v2711_v19 = vpop.f32.mrf.mxu0 }
  0xf6   : > { %v757_v21 = vadd.f32 %v2711_v19, %v3054_v25  ;;  %2740 = vmatprep.mubr.msk.bf16.mxu1 %vm879_vm2, %v851_v17  ;;  %v824_v28 = vmax.f32 %v746_v20, 0.0 }
  0xf7   : > { %v748_v23 = vpop.f32.mrf.mxu0  ;;  %2741 = vmatmul.mubr.msk.bf16.gmra.mxu1 %vm879_vm2, %v852_v18 }
  0xf8   : > { %v749_v24 = vadd.f32 %v3054_v25, %v748_v23  ;;  %v827_v26 = vmax.f32 %v757_v21, 0.0 }
  0xf9   : > { %v2714_v27 = vpop.f32.mrf.mxu0 }
  0xfa   : > { %v825_v29 = vmax.f32 %v749_v24, 0.0  ;;  %v854_v33 = vpack.c.bf16 %v827_v26, %v826_v30  ;;  %v770_v37 = vadd.f32 %v2714_v27, %v3054_v25 }
  0xfb   : > { %v761_v31 = vpop.f32.mrf.mxu0 }
  0xfc   : > { %v853_v32 = vpack.c.bf16 %v825_v29, %v824_v28  ;;  %v762_v35 = vadd.f32 %v3054_v25, %v761_v31  ;;  %v830_v44 = vmax.f32 %v770_v37, 0.0 }
  0xfd   : > { %v2715_v34 = vpop.f32.mrf.mxu0 }
  0xfe   : > { %v773_v36 = vadd.f32 %v2715_v34, %v3054_v25  ;;  %2744 = vmatprep.mubr.msk.bf16.mxu1 %vm879_vm2, %v853_v32  ;;  %v828_v42 = vmax.f32 %v762_v35, 0.0 }
  0xff   : > { %v764_v38 = vpop.f32.mrf.mxu0  ;;  %2745 = vmatmul.mubr.msk.bf16.gmra.mxu1 %vm879_vm2, %v854_v33 }
 0x100   : > { %v765_v39 = vadd.f32 %v3054_v25, %v764_v38  ;;  %v831_v40 = vmax.f32 %v773_v36, 0.0 }
 0x101   : > { %v2718_v41 = vpop.f32.mrf.mxu0 }
 0x102   : > { %v829_v43 = vmax.f32 %v765_v39, 0.0  ;;  %v856_v47 = vpack.c.bf16 %v831_v40, %v830_v44  ;;  %v786_v51 = vadd.f32 %v2718_v41, %v3054_v25 }
 0x103   : > { %v777_v45 = vpop.f32.mrf.mxu0 }
 0x104   : > { %v855_v46 = vpack.c.bf16 %v829_v43, %v828_v42  ;;  %v778_v49 = vadd.f32 %v3054_v25, %v777_v45  ;;  %v834_v58 = vmax.f32 %v786_v51, 0.0 }
 0x105   : > { %v2719_v48 = vpop.f32.mrf.mxu0 }
 0x106   : > { %v789_v50 = vadd.f32 %v2719_v48, %v3054_v25  ;;  %2748 = vmatprep.mubr.msk.bf16.mxu1 %vm879_vm2, %v855_v46  ;;  %v832_v56 = vmax.f32 %v778_v49, 0.0 }
 0x107   : > { %v780_v52 = vpop.f32.mrf.mxu0  ;;  %2749 = vmatmul.mubr.msk.bf16.gmra.mxu1 %vm879_vm2, %v856_v47 }
 0x108   : > { %v781_v53 = vadd.f32 %v3054_v25, %v780_v52  ;;  %v835_v54 = vmax.f32 %v789_v50, 0.0 }
 0x109   : > { %v2722_v55 = vpop.f32.mrf.mxu0 }
 0x10a   : > { %v833_v57 = vmax.f32 %v781_v53, 0.0  ;;  %v858_v61 = vpack.c.bf16 %v835_v54, %v834_v58  ;;  %v802_v1 = vadd.f32 %v2722_v55, %v3054_v25 }
 0x10b   : > { %v793_v59 = vpop.f32.mrf.mxu0 }
 0x10c   : > { %v857_v60 = vpack.c.bf16 %v833_v57, %v832_v56  ;;  %v794_v63 = vadd.f32 %v3054_v25, %v793_v59  ;;  %v838_v10 = vmax.f32 %v802_v1, 0.0 }
 0x10d   : > { %v2723_v62 = vpop.f32.mrf.mxu0 }
 0x10e   : > { %v805_v0 = vadd.f32 %v2723_v62, %v3054_v25  ;;  %2752 = vmatprep.mubr.msk.bf16.mxu1 %vm879_vm2, %v857_v60  ;;  %v836_v7 = vmax.f32 %v794_v63, 0.0 }
 0x10f   : > { %v796_v2 = vpop.f32.mrf.mxu0  ;;  %2753 = vmatmul.mubr.msk.bf16.gmra.mxu1 %vm879_vm2, %v858_v61 }
 0x110   : > { %v797_v4 = vadd.f32 %v3054_v25, %v796_v2  ;;  %v839_v5 = vmax.f32 %v805_v0, 0.0 }
 0x111   : > { %v2764_v6 = vpop.f32.mrf.mxu0 }
 0x112   : > { %v837_v8 = vmax.f32 %v797_v4, 0.0  ;;  %v1336_v9 = vadd.f32 %v2764_v6, %v3107_v3  ;;  %v860_v15 = vpack.c.bf16 %v839_v5, %v838_v10 }
 0x113   : > { %v1327_v11 = vpop.f32.mrf.mxu0 }
 0x114   : > { %v859_v12 = vpack.c.bf16 %v837_v8, %v836_v7  ;;  %v1456_v13 = vmax.f32 %v1336_v9, 0.0  ;;  %v1328_v14 = vadd.f32 %v3107_v3, %v1327_v11 }
 0x115   : > { %v2765_v16 = vpop.f32.mrf.mxu0 }
 0x116   : > { %v1454_v17 = vmax.f32 %v1328_v14, 0.0  ;;  %v1339_v18 = vadd.f32 %v2765_v16, %v3107_v3  ;;  %2756 = vmatprep.mubr.msk.bf16.mxu1 %vm879_vm2, %v859_v12  ;;  %v2590_v25 = vpack.c.bf16 %v1456_v13, %v1456_v13 }
 0x117   : > { %2757 = vmatmul.mubr.msk.bf16.gmra.mxu1 %vm879_vm2, %v860_v15  ;;  %v1330_v19 = vpop.f32.mrf.mxu0 }
 0x118   : > { %v1457_v20 = vmax.f32 %v1339_v18, 0.0  ;;  %v1331_v21 = vadd.f32 %v3107_v3, %v1330_v19  ;;  %2010 = vrot.lane.b32.xlu1 %v2590_v25, %s2901_s26  ;;  %v2588_v22 = vpack.c.bf16 %v1454_v17, %v1454_v17 }
 0x119   : > { %v2768_v23 = vpop.f32.mrf.mxu0 }
 0x11a   : > { %v2591_v24 = vpack.c.bf16 %v1457_v20, %v1457_v20  ;;  %v1455_v26 = vmax.f32 %v1331_v21, 0.0  ;;  %v1352_v27 = vadd.f32 %v2768_v23, %v3107_v3  ;;  %2006 = vrot.lane.b32.xlu0 %v2588_v22, %s2901_s26  ;;  %v1492_v33 = vpack.c.bf16 %v1457_v20, %v1456_v13 }
 0x11b   : > { %v1343_v28 = vpop.f32.mrf.mxu0 }
 0x11c   : > { %v1491_v29 = vpack.c.bf16 %v1455_v26, %v1454_v17  ;;  %v2589_v30 = vpack.c.bf16 %v1455_v26, %v1455_v26  ;;  %v1460_v31 = vmax.f32 %v1352_v27, 0.0  ;;  %v1344_v32 = vadd.f32 %v3107_v3, %v1343_v28  ;;  %2012 = vrot.lane.b32.xlu1 %v2591_v24, %s2901_s26 }
 0x11d   : > { %v2769_v34 = vpop.f32.mrf.mxu0 }
 0x11e   : > { %v1355_v35 = vadd.f32 %v2769_v34, %v3107_v3  ;;  %2008 = vrot.lane.b32.xlu0 %v2589_v30, %s2901_s26  ;;  %2798 = vmatprep.mubr.msk.bf16.mxu1 %vm879_vm2, %v1491_v29  ;;  %v2594_v37 = vpack.c.bf16 %v1460_v31, %v1460_v31  ;;  %v1458_v38 = vmax.f32 %v1344_v32, 0.0 }
 0x11f   : > { %v1346_v36 = vpop.f32.mrf.mxu0  ;;  %2799 = vmatmul.mubr.msk.bf16.vlgmr.msra.gmra.mxu1 %vm879_vm2, %v1492_v33 }
 0x120   : > { %v1461_v39 = vmax.f32 %v1355_v35, 0.0  ;;  %v1347_v40 = vadd.f32 %v3107_v3, %v1346_v36  ;;  %v2592_v46 = vpack.c.bf16 %v1458_v38, %v1458_v38 }
 0x121   : > { %v2772_v41 = vpop.f32.mrf.mxu0 }
 0x122   : > { %v2595_v42 = vpack.c.bf16 %v1461_v39, %v1461_v39  ;;  %v1459_v43 = vmax.f32 %v1347_v40, 0.0  ;;  %v1368_v44 = vadd.f32 %v2772_v41, %v3107_v3  ;;  %2018 = vrot.lane.b32.xlu0 %v2594_v37, %s2901_s26  ;;  %v1494_v50 = vpack.c.bf16 %v1461_v39, %v1460_v31 }
 0x123   : > { %v1359_v45 = vpop.f32.mrf.mxu0 }
 0x124   : > { %v1493_v47 = vpack.c.bf16 %v1459_v43, %v1458_v38  ;;  %v1464_v48 = vmax.f32 %v1368_v44, 0.0  ;;  %v1360_v49 = vadd.f32 %v3107_v3, %v1359_v45  ;;  %2020 = vrot.lane.b32.xlu1 %v2595_v42, %s2901_s26  ;;  %v2593_v52 = vpack.c.bf16 %v1459_v43, %v1459_v43 }
 0x125   : > { %v2773_v51 = vpop.f32.mrf.mxu0 }
 0x126   : > { %v1371_v53 = vadd.f32 %v2773_v51, %v3107_v3  ;;  %2014 = vrot.lane.b32.xlu0 %v2592_v46, %s2901_s26  ;;  %2802 = vmatprep.mubr.msk.bf16.mxu1 %vm879_vm2, %v1493_v47  ;;  %v2598_v55 = vpack.c.bf16 %v1464_v48, %v1464_v48  ;;  %v1462_v56 = vmax.f32 %v1360_v49, 0.0 }
 0x127   : > { %v1362_v54 = vpop.f32.mrf.mxu0  ;;  %2803 = vmatmul.mubr.msk.bf16.gmra.mxu1 %vm879_vm2, %v1494_v50 }
 0x128   : > { %v1465_v57 = vmax.f32 %v1371_v53, 0.0  ;;  %v1363_v58 = vadd.f32 %v3107_v3, %v1362_v54  ;;  %2016 = vrot.lane.b32.xlu1 %v2593_v52, %s2901_s26  ;;  %v2596_v0 = vpack.c.bf16 %v1462_v56, %v1462_v56 }
 0x129   : > { %v2776_v59 = vpop.f32.mrf.mxu0 }
 0x12a   : > { %v2599_v60 = vpack.c.bf16 %v1465_v57, %v1465_v57  ;;  %v1463_v61 = vmax.f32 %v1363_v58, 0.0  ;;  %v1384_v62 = vadd.f32 %v2776_v59, %v3107_v3  ;;  %2026 = vrot.lane.b32.xlu0 %v2598_v55, %s2901_s26  ;;  %v1496_v5 = vpack.c.bf16 %v1465_v57, %v1464_v48 }
 0x12b   : > { %v1375_v63 = vpop.f32.mrf.mxu0 }
 0x12c   : > { %v1495_v1 = vpack.c.bf16 %v1463_v61, %v1462_v56  ;;  %v1468_v2 = vmax.f32 %v1384_v62, 0.0  ;;  %v1376_v4 = vadd.f32 %v3107_v3, %v1375_v63  ;;  %2028 = vrot.lane.b32.xlu1 %v2599_v60, %s2901_s26  ;;  %v2597_v7 = vpack.c.bf16 %v1463_v61, %v1463_v61 }
 0x12d   : > { %v2777_v6 = vpop.f32.mrf.mxu0 }
 0x12e   : > { %v1387_v8 = vadd.f32 %v2777_v6, %v3107_v3  ;;  %2022 = vrot.lane.b32.xlu0 %v2596_v0, %s2901_s26  ;;  %2806 = vmatprep.mubr.msk.bf16.mxu1 %vm879_vm2, %v1495_v1  ;;  %v2602_v10 = vpack.c.bf16 %v1468_v2, %v1468_v2  ;;  %v1466_v11 = vmax.f32 %v1376_v4, 0.0 }
 0x12f   : > { %v1378_v9 = vpop.f32.mrf.mxu0  ;;  %2807 = vmatmul.mubr.msk.bf16.gmra.mxu1 %vm879_vm2, %v1496_v5 }
 0x130   : > { %v1469_v12 = vmax.f32 %v1387_v8, 0.0  ;;  %v1379_v13 = vadd.f32 %v3107_v3, %v1378_v9  ;;  %2024 = vrot.lane.b32.xlu1 %v2597_v7, %s2901_s26  ;;  %v2600_v25 = vpack.c.bf16 %v1466_v11, %v1466_v11 }
 0x131   : > { %v2780_v14 = vpop.f32.mrf.mxu0 }
 0x132   : > { %v2603_v15 = vpack.c.bf16 %v1469_v12, %v1469_v12  ;;  %v1467_v16 = vmax.f32 %v1379_v13, 0.0  ;;  %v1400_v17 = vadd.f32 %v2780_v14, %v3107_v3  ;;  %2034 = vrot.lane.b32.xlu0 %v2602_v10, %s2901_s26  ;;  %v1498_v22 = vpack.c.bf16 %v1469_v12, %v1468_v2 }
 0x133   : > { %v1391_v18 = vpop.f32.mrf.mxu0 }
 0x134   : > { %v1497_v19 = vpack.c.bf16 %v1467_v16, %v1466_v11  ;;  %v1472_v20 = vmax.f32 %v1400_v17, 0.0  ;;  %v1392_v21 = vadd.f32 %v3107_v3, %v1391_v18  ;;  %2036 = vrot.lane.b32.xlu1 %v2603_v15, %s2901_s26  ;;  %v2601_v24 = vpack.c.bf16 %v1467_v16, %v1467_v16 }
 0x135   : > { %v2781_v23 = vpop.f32.mrf.mxu0 }
 0x136   : > { %v1403_v26 = vadd.f32 %v2781_v23, %v3107_v3  ;;  %2030 = vrot.lane.b32.xlu0 %v2600_v25, %s2901_s26  ;;  %2810 = vmatprep.mubr.msk.bf16.mxu1 %vm879_vm2, %v1497_v19  ;;  %v2606_v28 = vpack.c.bf16 %v1472_v20, %v1472_v20  ;;  %v1470_v29 = vmax.f32 %v1392_v21, 0.0 }
 0x137   : > { %v1394_v27 = vpop.f32.mrf.mxu0  ;;  %2811 = vmatmul.mubr.msk.bf16.gmra.mxu1 %vm879_vm2, %v1498_v22 }
 0x138   : > { %v1473_v30 = vmax.f32 %v1403_v26, 0.0  ;;  %v1395_v31 = vadd.f32 %v3107_v3, %v1394_v27  ;;  %2032 = vrot.lane.b32.xlu1 %v2601_v24, %s2901_s26  ;;  %v2604_v37 = vpack.c.bf16 %v1470_v29, %v1470_v29 }
 0x139   : > { %v2784_v32 = vpop.f32.mrf.mxu0 }
 0x13a   : > { %v2607_v33 = vpack.c.bf16 %v1473_v30, %v1473_v30  ;;  %v1471_v34 = vmax.f32 %v1395_v31, 0.0  ;;  %v1416_v35 = vadd.f32 %v2784_v32, %v3107_v3  ;;  %2042 = vrot.lane.b32.xlu0 %v2606_v28, %s2901_s26  ;;  %v1500_v41 = vpack.c.bf16 %v1473_v30, %v1472_v20 }
 0x13b   : > { %v1407_v36 = vpop.f32.mrf.mxu0 }
 0x13c   : > { %v1499_v38 = vpack.c.bf16 %v1471_v34, %v1470_v29  ;;  %v1476_v39 = vmax.f32 %v1416_v35, 0.0  ;;  %v1408_v40 = vadd.f32 %v3107_v3, %v1407_v36  ;;  %2044 = vrot.lane.b32.xlu1 %v2607_v33, %s2901_s26  ;;  %v2605_v43 = vpack.c.bf16 %v1471_v34, %v1471_v34 }
 0x13d   : > { %v2785_v42 = vpop.f32.mrf.mxu0 }
 0x13e   : > { %v1419_v44 = vadd.f32 %v2785_v42, %v3107_v3  ;;  %2038 = vrot.lane.b32.xlu0 %v2604_v37, %s2901_s26  ;;  %2814 = vmatprep.mubr.msk.bf16.mxu1 %vm879_vm2, %v1499_v38  ;;  %v2610_v46 = vpack.c.bf16 %v1476_v39, %v1476_v39  ;;  %v1474_v47 = vmax.f32 %v1408_v40, 0.0  ;;  %v3219_v37 = vld [vmem:[%s3489_s4] ss:$0 sm:$0xff] }
 0x13f   : > { %v1410_v45 = vpop.f32.mrf.mxu0  ;;  %2815 = vmatmul.mubr.msk.bf16.gmra.mxu1 %vm879_vm2, %v1500_v41 }
 0x140   : > { %v1477_v48 = vmax.f32 %v1419_v44, 0.0  ;;  %v1411_v49 = vadd.f32 %v3107_v3, %v1410_v45  ;;  %2040 = vrot.lane.b32.xlu1 %v2605_v43, %s2901_s26  ;;  %v2608_v55 = vpack.c.bf16 %v1474_v47, %v1474_v47 }
 0x141   : > { %v2788_v50 = vpop.f32.mrf.mxu0 }
 0x142   : > { %v2611_v51 = vpack.c.bf16 %v1477_v48, %v1477_v48  ;;  %v1475_v52 = vmax.f32 %v1411_v49, 0.0  ;;  %v1432_v53 = vadd.f32 %v2788_v50, %v3107_v3  ;;  %2050 = vrot.lane.b32.xlu0 %v2610_v46, %s2901_s26  ;;  %v1502_v59 = vpack.c.bf16 %v1477_v48, %v1476_v39 }
 0x143   : > { %v1423_v54 = vpop.f32.mrf.mxu0 }
 0x144   : > { %v1501_v56 = vpack.c.bf16 %v1475_v52, %v1474_v47  ;;  %v1480_v57 = vmax.f32 %v1432_v53, 0.0  ;;  %v1424_v58 = vadd.f32 %v3107_v3, %v1423_v54  ;;  %2052 = vrot.lane.b32.xlu1 %v2611_v51, %s2901_s26  ;;  %v2609_v61 = vpack.c.bf16 %v1475_v52, %v1475_v52 }
 0x145   : > { %v2789_v60 = vpop.f32.mrf.mxu0 }
 0x146   : > { %v1435_v62 = vadd.f32 %v2789_v60, %v3107_v3  ;;  %2046 = vrot.lane.b32.xlu0 %v2608_v55, %s2901_s26  ;;  %2818 = vmatprep.mubr.msk.bf16.mxu1 %vm879_vm2, %v1501_v56  ;;  %v2614_v0 = vpack.c.bf16 %v1480_v57, %v1480_v57  ;;  %v1478_v1 = vmax.f32 %v1424_v58, 0.0 }
 0x147   : > { %v1426_v63 = vpop.f32.mrf.mxu0  ;;  %2819 = vmatmul.mubr.msk.bf16.gmra.mxu1 %vm879_vm2, %v1502_v59 }
 0x148   : > { %v1481_v2 = vmax.f32 %v1435_v62, 0.0  ;;  %v1427_v4 = vadd.f32 %v3107_v3, %v1426_v63  ;;  %2048 = vrot.lane.b32.xlu1 %v2609_v61, %s2901_s26  ;;  %v2612_v9 = vpack.c.bf16 %v1478_v1, %v1478_v1 }
 0x149   : > { %v2792_v5 = vpop.f32.mrf.mxu0 }
 0x14a   : > { %v2615_v6 = vpack.c.bf16 %v1481_v2, %v1481_v2  ;;  %v1479_v7 = vmax.f32 %v1427_v4, 0.0  ;;  %2058 = vrot.lane.b32.xlu0 %v2614_v0, %s2901_s26  ;;  %v1448_v11 = vadd.f32 %v2792_v5, %v3107_v3  ;;  %v1504_v13 = vpack.c.bf16 %v1481_v2, %v1480_v57 }
 0x14b   : > { %v1439_v8 = vpop.f32.mrf.mxu0 }
 0x14c   : > { %v1503_v10 = vpack.c.bf16 %v1479_v7, %v1478_v1  ;;  %v1440_v12 = vadd.f32 %v3107_v3, %v1439_v8  ;;  %2060 = vrot.lane.b32.xlu1 %v2615_v6, %s2901_s26  ;;  %v2613_v15 = vpack.c.bf16 %v1479_v7, %v1479_v7  ;;  %v1484_v25 = vmax.f32 %v1448_v11, 0.0 }
 0x14d   : > { %v2793_v14 = vpop.f32.mrf.mxu0 }
 0x14e   : > { %v1482_v16 = vmax.f32 %v1440_v12, 0.0  ;;  %v1451_v17 = vadd.f32 %v2793_v14, %v3107_v3  ;;  %2054 = vrot.lane.b32.xlu0 %v2612_v9, %s2901_s26  ;;  %2822 = vmatprep.mubr.msk.bf16.mxu1 %vm879_vm2, %v1503_v10  ;;  %v2618_v23 = vpack.c.bf16 %v1484_v25, %v1484_v25 }
 0x14f   : > { %v1442_v18 = vpop.f32.mrf.mxu0  ;;  %2823 = vmatmul.mubr.msk.bf16.gmra.mxu1 %vm879_vm2, %v1504_v13 }
 0x150   : > { %v2616_v19 = vpack.c.bf16 %v1482_v16, %v1482_v16  ;;  %v1443_v20 = vadd.f32 %v3107_v3, %v1442_v18  ;;  %2056 = vrot.lane.b32.xlu1 %v2613_v15, %s2901_s26  ;;  %v1485_v21 = vmax.f32 %v1451_v17, 0.0 }
 0x152   : > { %v1483_v22 = vmax.f32 %v1443_v20, 0.0  ;;  %2062 = vrot.lane.b32.xlu0 %v2616_v19, %s2901_s26  ;;  %v1506_v27 = vpack.c.bf16 %v1485_v21, %v1484_v25  ;;  %v2619_v28 = vpack.c.bf16 %v1485_v21, %v1485_v21 }
 0x154   : > { %v1505_v24 = vpack.c.bf16 %v1483_v22, %v1482_v16  ;;  %v2617_v26 = vpack.c.bf16 %v1483_v22, %v1483_v22 }
 0x156   : > { %2064 = vrot.lane.b32.xlu1 %v2617_v26, %s2901_s26  ;;  %2066 = vrot.lane.b32.xlu0 %v2618_v23, %s2901_s26 }
 0x157   : > { %2826 = vmatprep.mubr.msk.bf16.mxu1 %vm879_vm2, %v1505_v24 }
 0x158   : > { %2827 = vmatmul.mubr.msk.bf16.gmra.mxu1 %vm879_vm2, %v1506_v27 }
 0x15a   : > { %2068 = vrot.lane.b32.xlu1 %v2619_v28, %s2901_s26 }
 0x18a   : > { %v2011_v3 = vpop.permute.xlu1 %2010 }
 0x18b   : > { %2104 = vst.msk [vmem:[%s3196_s29 + $0x8] sm:$0xf] %vm1249_vm3, %v2011_v3 }
 0x18c   : > { %v2007_v29 = vpop.permute.xlu0 %2006 }
 0x18d   : > { %2102 = vst.msk [vmem:[%s3196_s29] sm:$0xf] %vm1249_vm3, %v2007_v29 }
 0x18e   : > { %v2013_v30 = vpop.permute.xlu1 %2012 }
 0x18f   : > { %2105 = vst.msk [vmem:[%s3196_s29 + $0xc] sm:$0xf] %vm1249_vm3, %v2013_v30 }
 0x190   : > { %v2009_v31 = vpop.permute.xlu0 %2008 }
 0x191   : > { %2103 = vst.msk [vmem:[%s3196_s29 + $0x4] sm:$0xf] %vm1249_vm3, %v2009_v31 }
 0x194   : > { %v2019_v32 = vpop.permute.xlu0 %2018 }
 0x195   : > { %2108 = vst.msk [vmem:[%s3196_s29 + $0x18] sm:$0xf] %vm1249_vm3, %v2019_v32 }
 0x196   : > { %v2021_v33 = vpop.permute.xlu1 %2020 }
 0x197   : > { %2109 = vst.msk [vmem:[%s3196_s29 + $0x1c] sm:$0xf] %vm1249_vm3, %v2021_v33 }
 0x198   : > { %v2015_v34 = vpop.permute.xlu0 %2014 }
 0x199   : > { %2106 = vst.msk [vmem:[%s3196_s29 + $0x10] sm:$0xf] %vm1249_vm3, %v2015_v34 }
 0x19a   : > { %v2017_v35 = vpop.permute.xlu1 %2016 }
 0x19b   : > { %2107 = vst.msk [vmem:[%s3196_s29 + $0x14] sm:$0xf] %vm1249_vm3, %v2017_v35 }
 0x19c   : > { %v2027_v36 = vpop.permute.xlu0 %2026 }
 0x19d   : > { %2112 = vst.msk [vmem:[%s3196_s29 + $0x28] sm:$0xf] %vm1249_vm3, %v2027_v36 }
 0x19e   : > { %v2029_v38 = vpop.permute.xlu1 %2028 }
 0x19f   : > { %2113 = vst.msk [vmem:[%s3196_s29 + $0x2c] sm:$0xf] %vm1249_vm3, %v2029_v38  ;;  %v2730_v39 = vpop.f32.mrf.mxu1 }
 0x1a0   : > { %v971_v40 = vadd.f32 %v2730_v39, %v3219_v37  ;;  %v2023_v41 = vpop.permute.xlu0 %2022 }
 0x1a1   : > { %2110 = vst.msk [vmem:[%s3196_s29 + $0x20] sm:$0xf] %vm1249_vm3, %v2023_v41  ;;  %v962_v42 = vpop.f32.mrf.mxu1 }
 0x1a2   : > { %v1091_v43 = vmax.f32 %v971_v40, 0.0  ;;  %v963_v44 = vadd.f32 %v3219_v37, %v962_v42  ;;  %v2025_v45 = vpop.permute.xlu1 %2024 }
 0x1a3   : > { %2111 = vst.msk [vmem:[%s3196_s29 + $0x24] sm:$0xf] %vm1249_vm3, %v2025_v45  ;;  %v2731_v46 = vpop.f32.mrf.mxu1 }
 0x1a4   : > { %v2526_v47 = vpack.c.bf16 %v1091_v43, %v1091_v43  ;;  %v1089_v48 = vmax.f32 %v963_v44, 0.0  ;;  %v974_v49 = vadd.f32 %v2731_v46, %v3219_v37  ;;  %v2035_v50 = vpop.permute.xlu0 %2034 }
 0x1a5   : > { %2116 = vst.msk [vmem:[%s3196_s29 + $0x38] sm:$0xf] %vm1249_vm3, %v2035_v50  ;;  %v965_v51 = vpop.f32.mrf.mxu1 }
 0x1a6   : > { %1252 = vst.msk [vmem:[%s3231_s15 + $0x8] sm:$0xf] %vm1249_vm3, %v2526_v47  ;;  %v2524_v52 = vpack.c.bf16 %v1089_v48, %v1089_v48  ;;  %v1092_v53 = vmax.f32 %v974_v49, 0.0  ;;  %v966_v54 = vadd.f32 %v3219_v37, %v965_v51  ;;  %v2037_v55 = vpop.permute.xlu1 %2036 }
 0x1a7   : > { %2117 = vst.msk [vmem:[%s3196_s29 + $0x3c] sm:$0xf] %vm1249_vm3, %v2037_v55  ;;  %v2734_v56 = vpop.f32.mrf.mxu1 }
 0x1a8   : > { %1250 = vst.msk [vmem:[%s3231_s15] sm:$0xf] %vm1249_vm3, %v2524_v52  ;;  %v2527_v57 = vpack.c.bf16 %v1092_v53, %v1092_v53  ;;  %v1090_v58 = vmax.f32 %v966_v54, 0.0  ;;  %v987_v59 = vadd.f32 %v2734_v56, %v3219_v37  ;;  %v2031_v60 = vpop.permute.xlu0 %2030 }
 0x1a9   : > { %2114 = vst.msk [vmem:[%s3196_s29 + $0x30] sm:$0xf] %vm1249_vm3, %v2031_v60  ;;  %v978_v61 = vpop.f32.mrf.mxu1 }
 0x1aa   : > { %1253 = vst.msk [vmem:[%s3231_s15 + $0xc] sm:$0xf] %vm1249_vm3, %v2527_v57  ;;  %v2525_v62 = vpack.c.bf16 %v1090_v58, %v1090_v58  ;;  %v1095_v63 = vmax.f32 %v987_v59, 0.0  ;;  %v979_v0 = vadd.f32 %v3219_v37, %v978_v61  ;;  %v2033_v1 = vpop.permute.xlu1 %2032 }
 0x1ab   : > { %2115 = vst.msk [vmem:[%s3196_s29 + $0x34] sm:$0xf] %vm1249_vm3, %v2033_v1  ;;  %v2735_v2 = vpop.f32.mrf.mxu1 }
 0x1ac   : > { %1251 = vst.msk [vmem:[%s3231_s15 + $0x4] sm:$0xf] %vm1249_vm3, %v2525_v62  ;;  %v2530_v4 = vpack.c.bf16 %v1095_v63, %v1095_v63  ;;  %v1093_v5 = vmax.f32 %v979_v0, 0.0  ;;  %v990_v6 = vadd.f32 %v2735_v2, %v3219_v37  ;;  %v2043_v7 = vpop.permute.xlu0 %2042 }
 0x1ad   : > { %2120 = vst.msk [vmem:[%s3196_s29 + $0x48] sm:$0xf] %vm1249_vm3, %v2043_v7  ;;  %v981_v8 = vpop.f32.mrf.mxu1 }
 0x1ae   : > { %1256 = vst.msk [vmem:[%s3231_s15 + $0x18] sm:$0xf] %vm1249_vm3, %v2530_v4  ;;  %v2528_v9 = vpack.c.bf16 %v1093_v5, %v1093_v5  ;;  %v1096_v10 = vmax.f32 %v990_v6, 0.0  ;;  %v982_v11 = vadd.f32 %v3219_v37, %v981_v8  ;;  %v2045_v12 = vpop.permute.xlu1 %2044 }
 0x1af   : > { %2121 = vst.msk [vmem:[%s3196_s29 + $0x4c] sm:$0xf] %vm1249_vm3, %v2045_v12  ;;  %v2738_v13 = vpop.f32.mrf.mxu1 }
 0x1b0   : > { %1254 = vst.msk [vmem:[%s3231_s15 + $0x10] sm:$0xf] %vm1249_vm3, %v2528_v9  ;;  %v2531_v14 = vpack.c.bf16 %v1096_v10, %v1096_v10  ;;  %v1094_v15 = vmax.f32 %v982_v11, 0.0  ;;  %v1003_v16 = vadd.f32 %v2738_v13, %v3219_v37  ;;  %v2039_v17 = vpop.permute.xlu0 %2038 }
 0x1b1   : > { %2118 = vst.msk [vmem:[%s3196_s29 + $0x40] sm:$0xf] %vm1249_vm3, %v2039_v17  ;;  %v994_v18 = vpop.f32.mrf.mxu1 }
 0x1b2   : > { %1257 = vst.msk [vmem:[%s3231_s15 + $0x1c] sm:$0xf] %vm1249_vm3, %v2531_v14  ;;  %v2529_v25 = vpack.c.bf16 %v1094_v15, %v1094_v15  ;;  %v1099_v19 = vmax.f32 %v1003_v16, 0.0  ;;  %v995_v20 = vadd.f32 %v3219_v37, %v994_v18  ;;  %v2041_v21 = vpop.permute.xlu1 %2040 }
 0x1b3   : > { %2119 = vst.msk [vmem:[%s3196_s29 + $0x44] sm:$0xf] %vm1249_vm3, %v2041_v21  ;;  %v2739_v22 = vpop.f32.mrf.mxu1 }
 0x1b4   : > { %1255 = vst.msk [vmem:[%s3231_s15 + $0x14] sm:$0xf] %vm1249_vm3, %v2529_v25  ;;  %v2534_v23 = vpack.c.bf16 %v1099_v19, %v1099_v19  ;;  %v1097_v24 = vmax.f32 %v995_v20, 0.0  ;;  %v1006_v26 = vadd.f32 %v2739_v22, %v3219_v37  ;;  %v2051_v27 = vpop.permute.xlu0 %2050 }
 0x1b5   : > { %2124 = vst.msk [vmem:[%s3196_s29 + $0x58] sm:$0xf] %vm1249_vm3, %v2051_v27  ;;  %v997_v28 = vpop.f32.mrf.mxu1 }
 0x1b6   : > { %1260 = vst.msk [vmem:[%s3231_s15 + $0x28] sm:$0xf] %vm1249_vm3, %v2534_v23  ;;  %v2532_v3 = vpack.c.bf16 %v1097_v24, %v1097_v24  ;;  %v1100_v29 = vmax.f32 %v1006_v26, 0.0  ;;  %v998_v30 = vadd.f32 %v3219_v37, %v997_v28  ;;  %v2053_v31 = vpop.permute.xlu1 %2052 }
 0x1b7   : > { %2125 = vst.msk [vmem:[%s3196_s29 + $0x5c] sm:$0xf] %vm1249_vm3, %v2053_v31  ;;  %v2742_v32 = vpop.f32.mrf.mxu1 }
 0x1b8   : > { %1258 = vst.msk [vmem:[%s3231_s15 + $0x20] sm:$0xf] %vm1249_vm3, %v2532_v3  ;;  %v2535_v33 = vpack.c.bf16 %v1100_v29, %v1100_v29  ;;  %v1098_v34 = vmax.f32 %v998_v30, 0.0  ;;  %v1019_v35 = vadd.f32 %v2742_v32, %v3219_v37  ;;  %v2047_v36 = vpop.permute.xlu0 %2046 }
 0x1b9   : > { %2122 = vst.msk [vmem:[%s3196_s29 + $0x50] sm:$0xf] %vm1249_vm3, %v2047_v36  ;;  %v1010_v38 = vpop.f32.mrf.mxu1 }
 0x1ba   : > { %1261 = vst.msk [vmem:[%s3231_s15 + $0x2c] sm:$0xf] %vm1249_vm3, %v2535_v33  ;;  %v2533_v39 = vpack.c.bf16 %v1098_v34, %v1098_v34  ;;  %v1103_v40 = vmax.f32 %v1019_v35, 0.0  ;;  %v1011_v41 = vadd.f32 %v3219_v37, %v1010_v38  ;;  %v2049_v42 = vpop.permute.xlu1 %2048 }
 0x1bb   : > { %2123 = vst.msk [vmem:[%s3196_s29 + $0x54] sm:$0xf] %vm1249_vm3, %v2049_v42  ;;  %v2743_v43 = vpop.f32.mrf.mxu1 }
 0x1bc   : > { %1259 = vst.msk [vmem:[%s3231_s15 + $0x24] sm:$0xf] %vm1249_vm3, %v2533_v39  ;;  %v2538_v44 = vpack.c.bf16 %v1103_v40, %v1103_v40  ;;  %v1101_v45 = vmax.f32 %v1011_v41, 0.0  ;;  %v1022_v46 = vadd.f32 %v2743_v43, %v3219_v37  ;;  %v2059_v47 = vpop.permute.xlu0 %2058 }
 0x1bd   : > { %2128 = vst.msk [vmem:[%s3196_s29 + $0x68] sm:$0xf] %vm1249_vm3, %v2059_v47  ;;  %v1013_v48 = vpop.f32.mrf.mxu1 }
 0x1be   : > { %1264 = vst.msk [vmem:[%s3231_s15 + $0x38] sm:$0xf] %vm1249_vm3, %v2538_v44  ;;  %v2536_v49 = vpack.c.bf16 %v1101_v45, %v1101_v45  ;;  %v1104_v50 = vmax.f32 %v1022_v46, 0.0  ;;  %v1014_v51 = vadd.f32 %v3219_v37, %v1013_v48  ;;  %v2061_v52 = vpop.permute.xlu1 %2060 }
 0x1bf   : > { %2129 = vst.msk [vmem:[%s3196_s29 + $0x6c] sm:$0xf] %vm1249_vm3, %v2061_v52  ;;  %v2746_v53 = vpop.f32.mrf.mxu1 }
 0x1c0   : > { %1262 = vst.msk [vmem:[%s3231_s15 + $0x30] sm:$0xf] %vm1249_vm3, %v2536_v49  ;;  %v2539_v54 = vpack.c.bf16 %v1104_v50, %v1104_v50  ;;  %v1102_v55 = vmax.f32 %v1014_v51, 0.0  ;;  %v1035_v56 = vadd.f32 %v2746_v53, %v3219_v37  ;;  %v2055_v57 = vpop.permute.xlu0 %2054 }
 0x1c1   : > { %2126 = vst.msk [vmem:[%s3196_s29 + $0x60] sm:$0xf] %vm1249_vm3, %v2055_v57  ;;  %v1026_v58 = vpop.f32.mrf.mxu1  ;;  %v3363_v57 = vld [vmem:[%s3493_s8] ss:$0 sm:$0xff] }
 0x1c2   : > { %1265 = vst.msk [vmem:[%s3231_s15 + $0x3c] sm:$0xf] %vm1249_vm3, %v2539_v54  ;;  %v2537_v59 = vpack.c.bf16 %v1102_v55, %v1102_v55  ;;  %v1107_v60 = vmax.f32 %v1035_v56, 0.0  ;;  %v1027_v61 = vadd.f32 %v3219_v37, %v1026_v58  ;;  %v2057_v62 = vpop.permute.xlu1 %2056 }
 0x1c3   : > { %2127 = vst.msk [vmem:[%s3196_s29 + $0x64] sm:$0xf] %vm1249_vm3, %v2057_v62  ;;  %v2747_v63 = vpop.f32.mrf.mxu1 }
 0x1c4   : > { %1263 = vst.msk [vmem:[%s3231_s15 + $0x34] sm:$0xf] %vm1249_vm3, %v2537_v59  ;;  %v2542_v0 = vpack.c.bf16 %v1107_v60, %v1107_v60  ;;  %v1105_v1 = vmax.f32 %v1027_v61, 0.0  ;;  %v1038_v2 = vadd.f32 %v2747_v63, %v3219_v37  ;;  %v2063_v4 = vpop.permute.xlu0 %2062 }
 0x1c5   : > { %2130 = vst.msk [vmem:[%s3196_s29 + $0x70] sm:$0xf] %vm1249_vm3, %v2063_v4  ;;  %v1029_v5 = vpop.f32.mrf.mxu1 }
 0x1c6   : > { %1268 = vst.msk [vmem:[%s3231_s15 + $0x48] sm:$0xf] %vm1249_vm3, %v2542_v0  ;;  %v2540_v6 = vpack.c.bf16 %v1105_v1, %v1105_v1  ;;  %v1108_v7 = vmax.f32 %v1038_v2, 0.0  ;;  %v1030_v8 = vadd.f32 %v3219_v37, %v1029_v5 }
 0x1c7   : > { %v2750_v9 = vpop.f32.mrf.mxu1 }
 0x1c8   : > { %1266 = vst.msk [vmem:[%s3231_s15 + $0x40] sm:$0xf] %vm1249_vm3, %v2540_v6  ;;  %v2543_v10 = vpack.c.bf16 %v1108_v7, %v1108_v7  ;;  %v1106_v11 = vmax.f32 %v1030_v8, 0.0  ;;  %v1051_v12 = vadd.f32 %v2750_v9, %v3219_v37  ;;  %v2065_v13 = vpop.permute.xlu1 %2064  ;;  %v2067_v14 = vpop.permute.xlu0 %2066 }
 0x1c9   : > { %2131 = vst.msk [vmem:[%s3196_s29 + $0x74] sm:$0xf] %vm1249_vm3, %v2065_v13  ;;  %2132 = vst.msk [vmem:[%s3196_s29 + $0x78] sm:$0xf] %vm1249_vm3, %v2067_v14  ;;  %v1042_v15 = vpop.f32.mrf.mxu1 }
 0x1ca   : > { %1269 = vst.msk [vmem:[%s3231_s15 + $0x4c] sm:$0xf] %vm1249_vm3, %v2543_v10  ;;  %v2541_v16 = vpack.c.bf16 %v1106_v11, %v1106_v11  ;;  %v1111_v17 = vmax.f32 %v1051_v12, 0.0  ;;  %v1043_v18 = vadd.f32 %v3219_v37, %v1042_v15 }
 0x1cb   : > { %v2751_v25 = vpop.f32.mrf.mxu1 }
 0x1cc   : > { %1267 = vst.msk [vmem:[%s3231_s15 + $0x44] sm:$0xf] %vm1249_vm3, %v2541_v16  ;;  %v2546_v19 = vpack.c.bf16 %v1111_v17, %v1111_v17  ;;  %v1109_v20 = vmax.f32 %v1043_v18, 0.0  ;;  %v1054_v21 = vadd.f32 %v2751_v25, %v3219_v37  ;;  %v2069_v22 = vpop.permute.xlu1 %2068 }
 0x1cd   : > { %2133 = vst.msk [vmem:[%s3196_s29 + $0x7c] sm:$0xf] %vm1249_vm3, %v2069_v22  ;;  %v1045_v23 = vpop.f32.mrf.mxu1 }
 0x1ce   : > { %1272 = vst.msk [vmem:[%s3231_s15 + $0x58] sm:$0xf] %vm1249_vm3, %v2546_v19  ;;  %v2544_v24 = vpack.c.bf16 %v1109_v20, %v1109_v20  ;;  %v1112_v26 = vmax.f32 %v1054_v21, 0.0  ;;  %v1046_v27 = vadd.f32 %v3219_v37, %v1045_v23 }
 0x1cf   : > { %v2754_v28 = vpop.f32.mrf.mxu1 }
 0x1d0   : > { %1270 = vst.msk [vmem:[%s3231_s15 + $0x50] sm:$0xf] %vm1249_vm3, %v2544_v24  ;;  %v2547_v3 = vpack.c.bf16 %v1112_v26, %v1112_v26  ;;  %v1110_v29 = vmax.f32 %v1046_v27, 0.0  ;;  %v1067_v30 = vadd.f32 %v2754_v28, %v3219_v37 }
 0x1d1   : > { %v1058_v31 = vpop.f32.mrf.mxu1 }
 0x1d2   : > { %1273 = vst.msk [vmem:[%s3231_s15 + $0x5c] sm:$0xf] %vm1249_vm3, %v2547_v3  ;;  %v2545_v32 = vpack.c.bf16 %v1110_v29, %v1110_v29  ;;  %v1115_v33 = vmax.f32 %v1067_v30, 0.0  ;;  %v1059_v34 = vadd.f32 %v3219_v37, %v1058_v31 }
 0x1d3   : > { %v2755_v35 = vpop.f32.mrf.mxu1 }
 0x1d4   : > { %1271 = vst.msk [vmem:[%s3231_s15 + $0x54] sm:$0xf] %vm1249_vm3, %v2545_v32  ;;  %v2550_v36 = vpack.c.bf16 %v1115_v33, %v1115_v33  ;;  %v1113_v38 = vmax.f32 %v1059_v34, 0.0  ;;  %v1070_v39 = vadd.f32 %v2755_v35, %v3219_v37 }
 0x1d5   : > { %v1061_v40 = vpop.f32.mrf.mxu1 }
 0x1d6   : > { %1276 = vst.msk [vmem:[%s3231_s15 + $0x68] sm:$0xf] %vm1249_vm3, %v2550_v36  ;;  %v2548_v41 = vpack.c.bf16 %v1113_v38, %v1113_v38  ;;  %v1116_v42 = vmax.f32 %v1070_v39, 0.0  ;;  %v1062_v43 = vadd.f32 %v3219_v37, %v1061_v40 }
 0x1d7   : > { %v2758_v44 = vpop.f32.mrf.mxu1 }
 0x1d8   : > { %1274 = vst.msk [vmem:[%s3231_s15 + $0x60] sm:$0xf] %vm1249_vm3, %v2548_v41  ;;  %v2551_v45 = vpack.c.bf16 %v1116_v42, %v1116_v42  ;;  %v1114_v46 = vmax.f32 %v1062_v43, 0.0  ;;  %v1083_v47 = vadd.f32 %v2758_v44, %v3219_v37 }
 0x1d9   : > { %v1074_v48 = vpop.f32.mrf.mxu1 }
 0x1da   : > { %1277 = vst.msk [vmem:[%s3231_s15 + $0x6c] sm:$0xf] %vm1249_vm3, %v2551_v45  ;;  %v2549_v49 = vpack.c.bf16 %v1114_v46, %v1114_v46  ;;  %v1119_v50 = vmax.f32 %v1083_v47, 0.0  ;;  %v1075_v51 = vadd.f32 %v3219_v37, %v1074_v48 }
 0x1db   : > { %v2759_v52 = vpop.f32.mrf.mxu1 }
 0x1dc   : > { %1275 = vst.msk [vmem:[%s3231_s15 + $0x64] sm:$0xf] %vm1249_vm3, %v2549_v49  ;;  %v2554_v53 = vpack.c.bf16 %v1119_v50, %v1119_v50  ;;  %v1117_v54 = vmax.f32 %v1075_v51, 0.0  ;;  %v1086_v55 = vadd.f32 %v2759_v52, %v3219_v37 }
 0x1dd   : > { %v1077_v56 = vpop.f32.mrf.mxu1 }
 0x1de   : > { %1280 = vst.msk [vmem:[%s3231_s15 + $0x78] sm:$0xf] %vm1249_vm3, %v2554_v53  ;;  %v2552_v58 = vpack.c.bf16 %v1117_v54, %v1117_v54  ;;  %v1120_v59 = vmax.f32 %v1086_v55, 0.0  ;;  %v1078_v60 = vadd.f32 %v3219_v37, %v1077_v56 }
 0x1df   : > { %v2800_v61 = vpop.f32.mrf.mxu1 }
 0x1e0   : > { %1278 = vst.msk [vmem:[%s3231_s15 + $0x70] sm:$0xf] %vm1249_vm3, %v2552_v58  ;;  %v2555_v62 = vpack.c.bf16 %v1120_v59, %v1120_v59  ;;  %v1118_v63 = vmax.f32 %v1078_v60, 0.0  ;;  %v1616_v0 = vadd.f32 %v2800_v61, %v3363_v57 }
 0x1e1   : > { %v1607_v1 = vpop.f32.mrf.mxu1 }
 0x1e2   : > { %1281 = vst.msk [vmem:[%s3231_s15 + $0x7c] sm:$0xf] %vm1249_vm3, %v2555_v62  ;;  %v2553_v2 = vpack.c.bf16 %v1118_v63, %v1118_v63  ;;  %v1736_v4 = vmax.f32 %v1616_v0, 0.0  ;;  %v1608_v5 = vadd.f32 %v3363_v57, %v1607_v1 }
 0x1e3   : > { %v2801_v37 = vpop.f32.mrf.mxu1 }
 0x1e4   : > { %1279 = vst.msk [vmem:[%s3231_s15 + $0x74] sm:$0xf] %vm1249_vm3, %v2553_v2  ;;  %v2558_v6 = vpack.c.bf16 %v1736_v4, %v1736_v4  ;;  %v1734_v7 = vmax.f32 %v1608_v5, 0.0  ;;  %v1619_v8 = vadd.f32 %v2801_v37, %v3363_v57 }
 0x1e5   : > { %v1610_v9 = vpop.f32.mrf.mxu1 }
 0x1e6   : > { %1896 = vst.msk [vmem:[%s3378_s23 + $0x8] sm:$0xf] %vm1249_vm3, %v2558_v6  ;;  %v2556_v10 = vpack.c.bf16 %v1734_v7, %v1734_v7  ;;  %v1737_v11 = vmax.f32 %v1619_v8, 0.0  ;;  %v1611_v12 = vadd.f32 %v3363_v57, %v1610_v9 }
 0x1e7   : > { %v2804_v13 = vpop.f32.mrf.mxu1 }
 0x1e8   : > { %1894 = vst.msk [vmem:[%s3378_s23] sm:$0xf] %vm1249_vm3, %v2556_v10  ;;  %v2559_v14 = vpack.c.bf16 %v1737_v11, %v1737_v11  ;;  %v1735_v15 = vmax.f32 %v1611_v12, 0.0  ;;  %v1632_v16 = vadd.f32 %v2804_v13, %v3363_v57 }
 0x1e9   : > { %v1623_v17 = vpop.f32.mrf.mxu1 }
 0x1ea   : > { %1897 = vst.msk [vmem:[%s3378_s23 + $0xc] sm:$0xf] %vm1249_vm3, %v2559_v14  ;;  %v2557_v18 = vpack.c.bf16 %v1735_v15, %v1735_v15  ;;  %v1740_v25 = vmax.f32 %v1632_v16, 0.0  ;;  %v1624_v19 = vadd.f32 %v3363_v57, %v1623_v17 }
 0x1eb   : > { %v2805_v20 = vpop.f32.mrf.mxu1 }
 0x1ec   : > { %1895 = vst.msk [vmem:[%s3378_s23 + $0x4] sm:$0xf] %vm1249_vm3, %v2557_v18  ;;  %v2562_v21 = vpack.c.bf16 %v1740_v25, %v1740_v25  ;;  %v1738_v22 = vmax.f32 %v1624_v19, 0.0  ;;  %v1635_v23 = vadd.f32 %v2805_v20, %v3363_v57 }
 0x1ed   : > { %v1626_v24 = vpop.f32.mrf.mxu1 }
 0x1ee   : > { %1900 = vst.msk [vmem:[%s3378_s23 + $0x18] sm:$0xf] %vm1249_vm3, %v2562_v21  ;;  %v2560_v26 = vpack.c.bf16 %v1738_v22, %v1738_v22  ;;  %v1741_v27 = vmax.f32 %v1635_v23, 0.0  ;;  %v1627_v28 = vadd.f32 %v3363_v57, %v1626_v24 }
 0x1ef   : > { %v2808_v3 = vpop.f32.mrf.mxu1 }
 0x1f0   : > { %1898 = vst.msk [vmem:[%s3378_s23 + $0x10] sm:$0xf] %vm1249_vm3, %v2560_v26  ;;  %v2563_v29 = vpack.c.bf16 %v1741_v27, %v1741_v27  ;;  %v1739_v30 = vmax.f32 %v1627_v28, 0.0  ;;  %v1648_v31 = vadd.f32 %v2808_v3, %v3363_v57 }
 0x1f1   : > { %v1639_v32 = vpop.f32.mrf.mxu1 }
 0x1f2   : > { %1901 = vst.msk [vmem:[%s3378_s23 + $0x1c] sm:$0xf] %vm1249_vm3, %v2563_v29  ;;  %v2561_v33 = vpack.c.bf16 %v1739_v30, %v1739_v30  ;;  %v1744_v34 = vmax.f32 %v1648_v31, 0.0  ;;  %v1640_v35 = vadd.f32 %v3363_v57, %v1639_v32 }
 0x1f3   : > { %v2809_v36 = vpop.f32.mrf.mxu1 }
 0x1f4   : > { %1899 = vst.msk [vmem:[%s3378_s23 + $0x14] sm:$0xf] %vm1249_vm3, %v2561_v33  ;;  %v2566_v38 = vpack.c.bf16 %v1744_v34, %v1744_v34  ;;  %v1742_v39 = vmax.f32 %v1640_v35, 0.0  ;;  %v1651_v40 = vadd.f32 %v2809_v36, %v3363_v57 }
 0x1f5   : > { %v1642_v41 = vpop.f32.mrf.mxu1 }
 0x1f6   : > { %1904 = vst.msk [vmem:[%s3378_s23 + $0x28] sm:$0xf] %vm1249_vm3, %v2566_v38  ;;  %v2564_v42 = vpack.c.bf16 %v1742_v39, %v1742_v39  ;;  %v1745_v43 = vmax.f32 %v1651_v40, 0.0  ;;  %v1643_v44 = vadd.f32 %v3363_v57, %v1642_v41 }
 0x1f7   : > { %v2812_v45 = vpop.f32.mrf.mxu1 }
 0x1f8   : > { %1902 = vst.msk [vmem:[%s3378_s23 + $0x20] sm:$0xf] %vm1249_vm3, %v2564_v42  ;;  %v2567_v46 = vpack.c.bf16 %v1745_v43, %v1745_v43  ;;  %v1743_v47 = vmax.f32 %v1643_v44, 0.0  ;;  %v1664_v48 = vadd.f32 %v2812_v45, %v3363_v57 }
 0x1f9   : > { %v1655_v49 = vpop.f32.mrf.mxu1 }
 0x1fa   : > { %1905 = vst.msk [vmem:[%s3378_s23 + $0x2c] sm:$0xf] %vm1249_vm3, %v2567_v46  ;;  %v2565_v50 = vpack.c.bf16 %v1743_v47, %v1743_v47  ;;  %v1748_v51 = vmax.f32 %v1664_v48, 0.0  ;;  %v1656_v52 = vadd.f32 %v3363_v57, %v1655_v49 }
 0x1fb   : > { %v2813_v53 = vpop.f32.mrf.mxu1 }
 0x1fc   : > { %1903 = vst.msk [vmem:[%s3378_s23 + $0x24] sm:$0xf] %vm1249_vm3, %v2565_v50  ;;  %v2570_v54 = vpack.c.bf16 %v1748_v51, %v1748_v51  ;;  %v1746_v55 = vmax.f32 %v1656_v52, 0.0  ;;  %v1667_v56 = vadd.f32 %v2813_v53, %v3363_v57 }
 0x1fd   : > { %v1658_v58 = vpop.f32.mrf.mxu1 }
 0x1fe   : > { %1908 = vst.msk [vmem:[%s3378_s23 + $0x38] sm:$0xf] %vm1249_vm3, %v2570_v54  ;;  %v2568_v59 = vpack.c.bf16 %v1746_v55, %v1746_v55  ;;  %v1749_v60 = vmax.f32 %v1667_v56, 0.0  ;;  %v1659_v61 = vadd.f32 %v3363_v57, %v1658_v58 }
 0x1ff   : > { %v2816_v62 = vpop.f32.mrf.mxu1 }
 0x200   : > { %1906 = vst.msk [vmem:[%s3378_s23 + $0x30] sm:$0xf] %vm1249_vm3, %v2568_v59  ;;  %v2571_v63 = vpack.c.bf16 %v1749_v60, %v1749_v60  ;;  %v1747_v0 = vmax.f32 %v1659_v61, 0.0  ;;  %v1680_v1 = vadd.f32 %v2816_v62, %v3363_v57 }
 0x201   : > { %v1671_v2 = vpop.f32.mrf.mxu1 }
 0x202   : > { %1909 = vst.msk [vmem:[%s3378_s23 + $0x3c] sm:$0xf] %vm1249_vm3, %v2571_v63  ;;  %v2569_v4 = vpack.c.bf16 %v1747_v0, %v1747_v0  ;;  %v1752_v5 = vmax.f32 %v1680_v1, 0.0  ;;  %v1672_v37 = vadd.f32 %v3363_v57, %v1671_v2 }
 0x203   : > { %v2817_v6 = vpop.f32.mrf.mxu1 }
 0x204   : > { %1907 = vst.msk [vmem:[%s3378_s23 + $0x34] sm:$0xf] %vm1249_vm3, %v2569_v4  ;;  %v2574_v7 = vpack.c.bf16 %v1752_v5, %v1752_v5  ;;  %v1750_v8 = vmax.f32 %v1672_v37, 0.0  ;;  %v1683_v9 = vadd.f32 %v2817_v6, %v3363_v57 }
 0x205   : > { %v1674_v10 = vpop.f32.mrf.mxu1 }
 0x206   : > { %1912 = vst.msk [vmem:[%s3378_s23 + $0x48] sm:$0xf] %vm1249_vm3, %v2574_v7  ;;  %v2572_v11 = vpack.c.bf16 %v1750_v8, %v1750_v8  ;;  %v1753_v12 = vmax.f32 %v1683_v9, 0.0  ;;  %v1675_v13 = vadd.f32 %v3363_v57, %v1674_v10 }
 0x207   : > { %v2820_v14 = vpop.f32.mrf.mxu1 }
 0x208   : > { %1910 = vst.msk [vmem:[%s3378_s23 + $0x40] sm:$0xf] %vm1249_vm3, %v2572_v11  ;;  %v2575_v15 = vpack.c.bf16 %v1753_v12, %v1753_v12  ;;  %v1751_v16 = vmax.f32 %v1675_v13, 0.0  ;;  %v1696_v17 = vadd.f32 %v2820_v14, %v3363_v57 }
 0x209   : > { %v1687_v18 = vpop.f32.mrf.mxu1 }
 0x20a   : > { %1913 = vst.msk [vmem:[%s3378_s23 + $0x4c] sm:$0xf] %vm1249_vm3, %v2575_v15  ;;  %v2573_v25 = vpack.c.bf16 %v1751_v16, %v1751_v16  ;;  %v1756_v19 = vmax.f32 %v1696_v17, 0.0  ;;  %v1688_v20 = vadd.f32 %v3363_v57, %v1687_v18 }
 0x20b   : > { %v2821_v21 = vpop.f32.mrf.mxu1 }
 0x20c   : > { %1911 = vst.msk [vmem:[%s3378_s23 + $0x44] sm:$0xf] %vm1249_vm3, %v2573_v25  ;;  %v2578_v22 = vpack.c.bf16 %v1756_v19, %v1756_v19  ;;  %v1754_v23 = vmax.f32 %v1688_v20, 0.0  ;;  %v1699_v24 = vadd.f32 %v2821_v21, %v3363_v57 }
 0x20d   : > { %v1690_v26 = vpop.f32.mrf.mxu1 }
 0x20e   : > { %1916 = vst.msk [vmem:[%s3378_s23 + $0x58] sm:$0xf] %vm1249_vm3, %v2578_v22  ;;  %v2576_v27 = vpack.c.bf16 %v1754_v23, %v1754_v23  ;;  %v1757_v28 = vmax.f32 %v1699_v24, 0.0  ;;  %v1691_v3 = vadd.f32 %v3363_v57, %v1690_v26 }
 0x20f   : > { %v2824_v29 = vpop.f32.mrf.mxu1 }
 0x210   : > { %1914 = vst.msk [vmem:[%s3378_s23 + $0x50] sm:$0xf] %vm1249_vm3, %v2576_v27  ;;  %v2579_v30 = vpack.c.bf16 %v1757_v28, %v1757_v28  ;;  %v1755_v31 = vmax.f32 %v1691_v3, 0.0  ;;  %v1712_v32 = vadd.f32 %v2824_v29, %v3363_v57 }
 0x211   : > { %v1703_v33 = vpop.f32.mrf.mxu1 }
 0x212   : > { %1917 = vst.msk [vmem:[%s3378_s23 + $0x5c] sm:$0xf] %vm1249_vm3, %v2579_v30  ;;  %v2577_v34 = vpack.c.bf16 %v1755_v31, %v1755_v31  ;;  %v1760_v35 = vmax.f32 %v1712_v32, 0.0  ;;  %v1704_v36 = vadd.f32 %v3363_v57, %v1703_v33 }
 0x213   : > { %v2825_v38 = vpop.f32.mrf.mxu1 }
 0x214   : > { %1915 = vst.msk [vmem:[%s3378_s23 + $0x54] sm:$0xf] %vm1249_vm3, %v2577_v34  ;;  %v2582_v39 = vpack.c.bf16 %v1760_v35, %v1760_v35  ;;  %v1758_v40 = vmax.f32 %v1704_v36, 0.0  ;;  %v1715_v41 = vadd.f32 %v2825_v38, %v3363_v57 }
 0x215   : > { %v1706_v42 = vpop.f32.mrf.mxu1 }
 0x216   : > { %1920 = vst.msk [vmem:[%s3378_s23 + $0x68] sm:$0xf] %vm1249_vm3, %v2582_v39  ;;  %v2580_v43 = vpack.c.bf16 %v1758_v40, %v1758_v40  ;;  %v1761_v44 = vmax.f32 %v1715_v41, 0.0  ;;  %v1707_v45 = vadd.f32 %v3363_v57, %v1706_v42 }
 0x218   : > { %1918 = vst.msk [vmem:[%s3378_s23 + $0x60] sm:$0xf] %vm1249_vm3, %v2580_v43  ;;  %v2583_v46 = vpack.c.bf16 %v1761_v44, %v1761_v44  ;;  %v1759_v47 = vmax.f32 %v1707_v45, 0.0  ;;  %v2828_v48 = vpop.f32.mrf.mxu1 }
 0x219   : > { %v1728_v49 = vadd.f32 %v2828_v48, %v3363_v57 }
 0x21a   : > { %1921 = vst.msk [vmem:[%s3378_s23 + $0x6c] sm:$0xf] %vm1249_vm3, %v2583_v46  ;;  %v2581_v50 = vpack.c.bf16 %v1759_v47, %v1759_v47  ;;  %v1719_v51 = vpop.f32.mrf.mxu1 }
 0x21b   : > { %v1764_v52 = vmax.f32 %v1728_v49, 0.0  ;;  %v1720_v53 = vadd.f32 %v3363_v57, %v1719_v51 }
 0x21c   : > { %1919 = vst.msk [vmem:[%s3378_s23 + $0x64] sm:$0xf] %vm1249_vm3, %v2581_v50  ;;  %v2829_v54 = vpop.f32.mrf.mxu1 }
 0x21d   : > { %v2586_v55 = vpack.c.bf16 %v1764_v52, %v1764_v52  ;;  %v1762_v56 = vmax.f32 %v1720_v53, 0.0  ;;  %v1731_v58 = vadd.f32 %v2829_v54, %v3363_v57 }
 0x21e   : > { %v1722_v59 = vpop.f32.mrf.mxu1 }
 0x21f   : > { %1924 = vst.msk [vmem:[%s3378_s23 + $0x78] sm:$0xf] %vm1249_vm3, %v2586_v55  ;;  %v2584_v60 = vpack.c.bf16 %v1762_v56, %v1762_v56  ;;  %v1765_v61 = vmax.f32 %v1731_v58, 0.0  ;;  %v1723_v62 = vadd.f32 %v3363_v57, %v1722_v59 }
 0x221   : > { %1922 = vst.msk [vmem:[%s3378_s23 + $0x70] sm:$0xf] %vm1249_vm3, %v2584_v60  ;;  %v2587_v63 = vpack.c.bf16 %v1765_v61, %v1765_v61  ;;  %v1763_v0 = vmax.f32 %v1723_v62, 0.0 }
 0x223   : > { %1925 = vst.msk [vmem:[%s3378_s23 + $0x7c] sm:$0xf] %vm1249_vm3, %v2587_v63  ;;  %v2585_v1 = vpack.c.bf16 %v1763_v0, %v1763_v0 }
 0x225   : > { %1923 = vst.msk [vmem:[%s3378_s23 + $0x74] sm:$0xf] %vm1249_vm3, %v2585_v1 }
 0x226 PF: > { %s22_s19 = sadd.s32 1, %s2899_s19   ;;  %s3497_s17 = smov %s2895_s18 }
 0x227   : > { %p19_p5 = scmp.ge.s32.totalorder %s22_s19, 4   ;;  %s3498_s18 = smov %s3500_s20 }
 0x229   :  { %21 = sbr.rel (!%p19_p5) target bundleno = 2 (0x2), region = 110 }

</bundles_post_ra>
